<compile_context>
chip_gen: v6e
topology: v6e:2x2x1
jax: 0.10.0
libtpu: 0.0.40
codegen_flags: <defaults>
</compile_context>

<pallas_src>
import functools

import jax
import jax.numpy as jnp
from jax import lax
from jax.experimental import pallas as pl
from jax.experimental.pallas import tpu as pltpu

C_IN, C_HID, C_OUT = 485, 60, 1   # module-defined channel sizes
HID_TAP = 64                      # per-tap row padding for layer1 outputs (>=60, mult of 8)
OUT_TAP = 8                       # per-tap row padding for layer2 outputs (>=1,  mult of 8)
TL_MAX = 2048                     # max time tile (lanes); sized for v7x's 64 MiB VMEM


def _round_up(v, m):
    return ((v + m - 1) // m) * m


def model_kernel(x_ref, el_ref, er_ref, w1_ref, b1_ref, w2_ref, b2_ref, o_ref,
                 *, L, TL):
    # x_ref : (1, 485, TL)       time tile of x (channels-first); lanes >= L are garbage
    # el_ref: (1, 1, 485, 1)     x[:, j*TL - 1]   (zeros for the first tile -> conv left pad)
    # er_ref: (1, 1, 485, 1)     x[:, (j+1)*TL]   (zeros past the end      -> conv right pad)
    # w1_ref: (128, 485)         rows [0:60] = layer1 tap0, rows [64:124] = layer1 tap1
    # b1_ref: (64, 1)
    # w2_ref: (16, 64)           row 0 = layer2 tap0, row 8 = layer2 tap1
    # b2_ref: (8, 1)
    # o_ref : (1, 1, TL)
    j = pl.program_id(1)

    x = x_ref[0]                                   # (485, TL)
    el = el_ref[0, 0]                              # (485, 1)
    er = er_ref[0, 0]                              # (485, 1)
    w1 = w1_ref[...]
    w2 = w2_ref[...]
    bias1 = b1_ref[...]                            # (64, 1)
    bias2 = b2_ref[...]                            # (8, 1)

    # ---- layer1: both conv taps fused in ONE matmul over the tile ----
    acat = jnp.dot(w1, x, preferred_element_type=jnp.float32)      # (128, TL)
    a0 = acat[0:HID_TAP, :]                        # tap0 @ x[:, j*TL + p]
    a1 = acat[HID_TAP:2 * HID_TAP, :]              # tap1 @ x[:, j*TL + p]

    # boundary-column contributions (tiny matmuls on the resident weights)
    a0_left = jnp.dot(w1, el, preferred_element_type=jnp.float32)[0:HID_TAP, :]
    a1_right = jnp.dot(w1, er, preferred_element_type=jnp.float32)[HID_TAP:2 * HID_TAP, :]

    lane = lax.broadcasted_iota(jnp.int32, (HID_TAP, TL), 1)
    # zero tap1 at/after the true sequence end: implements the conv right zero-pad
    # and neutralizes garbage lanes of a partial tile.
    a1 = jnp.where(lane < (L - j * TL), a1, 0.0)

    # shift tap0 one step right (output t uses tap0 @ x[t-1]); lane 0 comes from the edge
    a0_rolled = pltpu.roll(a0, shift=1, axis=1)    # column p holds a0[:, p-1 (mod TL)]
    a0s = jnp.where(lane == 0, a0_left, a0_rolled)

    h1 = jnp.maximum(a0s + a1 + bias1, 0.0)                        # (64, TL)
    # hidden column at global index (j+1)*TL, needed by the tile's last output column
    h1_r = jnp.maximum(a0_rolled[:, 0:1] + a1_right + bias1, 0.0)  # (64, 1)

    # ---- layer2: same fused-tap + roll scheme ----
    gcat = jnp.dot(w2, h1, preferred_element_type=jnp.float32)     # (16, TL)
    g0 = gcat[0:OUT_TAP, :]
    g1 = gcat[OUT_TAP:2 * OUT_TAP, :]
    g1_right = jnp.dot(w2, h1_r,
                       preferred_element_type=jnp.float32)[OUT_TAP:2 * OUT_TAP, :]

    lane8 = lax.broadcasted_iota(jnp.int32, (OUT_TAP, TL), 1)
    g1_next = jnp.where(lane8 == TL - 1, g1_right,
                        pltpu.roll(g1, shift=TL - 1, axis=1))      # g1[:, p+1]

    y = jnp.maximum(g0 + g1_next + bias2, 0.0)                     # (8, TL)
    # lane-dense output: single real channel (row 0), time on the lane axis
    o_ref[0] = y[0:1, :]


def model_forward(x_ncl, w1cat, b1p, w2cat, b2p, *, tile_l=TL_MAX):
    """x_ncl: (N, 485, L) float32 -> (N, 1, L) float32 (PyTorch Conv1d semantics)."""
    N, C, L = x_ncl.shape
    assert C == C_IN
    assert tile_l % 128 == 0
    TL = min(_round_up(L, 128), tile_l)            # lane tile, always a multiple of 128
    nL = -(-L // TL)                               # number of time tiles

    # Tiny per-tile boundary columns (so x itself needs no padded HBM copy):
    #   edges_l[n, j, :, 0] = x[n, :, j*TL - 1]   (zero for j == 0  -> conv left pad)
    #   edges_r[n, j, :, 0] = x[n, :, (j+1)*TL]   (zero past the end -> conv right pad)
    edges_l = jnp.zeros((N, nL, C_IN, 1), jnp.float32)
    edges_r = jnp.zeros((N, nL, C_IN, 1), jnp.float32)
    if nL > 1:
        lefts = x_ncl[:, :, TL - 1:(nL - 1) * TL:TL]          # (N, C, nL-1)
        rights = x_ncl[:, :, TL:(nL - 1) * TL + 1:TL]         # (N, C, nL-1)
        edges_l = edges_l.at[:, 1:, :, 0].set(jnp.moveaxis(lefts, 2, 1))
        edges_r = edges_r.at[:, :nL - 1, :, 0].set(jnp.moveaxis(rights, 2, 1))

    cost = pl.CostEstimate(
        flops=2 * N * L * (2 * C_HID * C_IN + 2 * C_HID * C_OUT),
        transcendentals=0,
        bytes_accessed=N * L * (C_IN * 4 + 4))

    out = pl.pallas_call(
        functools.partial(model_kernel, L=L, TL=TL),
        out_shape=jax.ShapeDtypeStruct((N, 1, L), jnp.float32),
        grid=(N, nL),
        in_specs=[
            pl.BlockSpec((1, C_IN, TL), lambda n, j: (n, 0, j)),
            pl.BlockSpec((1, 1, C_IN, 1), lambda n, j: (n, j, 0, 0)),
            pl.BlockSpec((1, 1, C_IN, 1), lambda n, j: (n, j, 0, 0)),
            pl.BlockSpec((2 * HID_TAP, C_IN), lambda n, j: (0, 0)),
            pl.BlockSpec((HID_TAP, 1), lambda n, j: (0, 0)),
            pl.BlockSpec((2 * OUT_TAP, HID_TAP), lambda n, j: (0, 0)),
            pl.BlockSpec((OUT_TAP, 1), lambda n, j: (0, 0)),
        ],
        out_specs=pl.BlockSpec((1, 1, TL), lambda n, j: (n, 0, j)),
        compiler_params=pltpu.CompilerParams(
            dimension_semantics=("parallel", "parallel")),
        cost_estimate=cost,
    )(x_ncl, edges_l, edges_r, w1cat, b1p, w2cat, b2p)

    return out   # (N, 1, L), PyTorch NCL layout — no post-processing needed


def init_params(key):
    """Deterministic synthetic parameters with PyTorch Conv1d weight shapes."""
    k1, k2, k3, k4 = jax.random.split(key, 4)
    # PyTorch layout: weight (O, I, K), bias (O,)
    w1 = jax.random.normal(k1, (C_HID, C_IN, 2), jnp.float32) * 0.05
    b1 = jax.random.normal(k2, (C_HID,), jnp.float32) * 0.05
    w2 = jax.random.normal(k3, (C_OUT, C_HID, 2), jnp.float32) * 0.05
    b2 = jax.random.normal(k4, (C_OUT,), jnp.float32) * 0.05
    return w1, b1, w2, b2


def pack_params(w1, b1, w2, b2):
    """PyTorch Conv1d params (O, I, K) -> fused (tap-stacked) matmul operands."""
    # layer1: stack the two taps along the row (M) axis -> one (128, 485) matmul LHS
    w1cat = jnp.zeros((2 * HID_TAP, C_IN), jnp.float32)
    w1cat = w1cat.at[0:C_HID, :].set(w1[:, :, 0])
    w1cat = w1cat.at[HID_TAP:HID_TAP + C_HID, :].set(w1[:, :, 1])
    b1p = jnp.zeros((HID_TAP, 1), jnp.float32).at[0:C_HID, 0].set(b1)

    # layer2: same, one (16, 64) matmul LHS
    w2cat = jnp.zeros((2 * OUT_TAP, HID_TAP), jnp.float32)
    w2cat = w2cat.at[0:C_OUT, 0:C_HID].set(w2[:, :, 0])
    w2cat = w2cat.at[OUT_TAP:OUT_TAP + C_OUT, 0:C_HID].set(w2[:, :, 1])
    b2p = jnp.zeros((OUT_TAP, 1), jnp.float32).at[0:C_OUT, 0].set(b2)
    return w1cat, b1p, w2cat, b2p


def reference_forward(x_ncl, w1, b1, w2, b2):
    """Pure-JAX reference matching torch.nn.Conv1d semantics."""
    y = jax.lax.conv_general_dilated(
        x_ncl, w1, window_strides=(1,), padding=[(1, 1)],
        dimension_numbers=("NCH", "OIH", "NCH"))
    y = jax.nn.relu(y + b1[None, :, None])
    y = jax.lax.conv_general_dilated(
        y, w2, window_strides=(1,), padding=[(0, 0)],
        dimension_numbers=("NCH", "OIH", "NCH"))
    y = jax.nn.relu(y + b2[None, :, None])
    return y


if __name__ == "__main__":
    key = jax.random.PRNGKey(0)
    kx, kp, kx2 = jax.random.split(key, 3)

    w1, b1, w2, b2 = init_params(kp)
    w1cat, b1p, w2cat, b2p = pack_params(w1, b1, w2, b2)

    fwd = jax.jit(model_forward, static_argnames=("tile_l",))

    # Case 1: small shapes (single tile; exercises the conv zero-pads at both ends).
    N, L = 2, 16
    x = jax.random.normal(kx, (N, C_IN, L), jnp.float32)   # NCL like PyTorch
    out = jax.block_until_ready(fwd(x, w1cat, b1p, w2cat, b2p))
    ref = jax.block_until_ready(reference_forward(x, w1, b1, w2, b2))
    assert out.shape == (N, 1, L), out.shape
    assert jnp.allclose(out, ref, atol=1e-4, rtol=1e-4), "mismatch vs reference (case 1)"

    # Case 2: multi-tile time grid with a partial last tile (small tile_l keeps it cheap).
    N2, L2 = 2, 300
    x2 = jax.random.normal(kx2, (N2, C_IN, L2), jnp.float32)
    out2 = jax.block_until_ready(fwd(x2, w1cat, b1p, w2cat, b2p, tile_l=128))
    ref2 = jax.block_until_ready(reference_forward(x2, w1, b1, w2, b2))
    assert out2.shape == (N2, 1, L2), out2.shape
    assert jnp.allclose(out2, ref2, atol=1e-4, rtol=1e-4), "mismatch vs reference (case 2)"

    print("KERNEL_OK")
</pallas_src>

<mosaic_0001>
module attributes {stable_mosaic.version = 11 : i64} {
  func.func @model_kernel(%arg0: i32, %arg1: i32, %arg2: memref<1x485x128xf32, #tpu.memory_space<vmem>>, %arg3: memref<1x1x485x1xf32, #tpu.memory_space<vmem>>, %arg4: memref<1x1x485x1xf32, #tpu.memory_space<vmem>>, %arg5: memref<128x485xf32, #tpu.memory_space<vmem>>, %arg6: memref<64x1xf32, #tpu.memory_space<vmem>>, %arg7: memref<16x64xf32, #tpu.memory_space<vmem>>, %arg8: memref<8x1xf32, #tpu.memory_space<vmem>>, %arg9: memref<1x1x128xf32, #tpu.memory_space<vmem>>) attributes {dimension_semantics = [#tpu.dimension_semantics<parallel>, #tpu.dimension_semantics<parallel>], iteration_bounds = array<i64: 2, 1>, scalar_prefetch = 0 : i64, scratch_operands = 0 : i64, tpu.core_type = #tpu.core_type<tc>, window_params = [{transform_indices = @transform_0, window_bounds = array<i64: 1, 485, 128>}, {transform_indices = @transform_1, window_bounds = array<i64: 1, 1, 485, 1>}, {transform_indices = @transform_2, window_bounds = array<i64: 1, 1, 485, 1>}, {pipeline_mode = #tpu.pipeline_mode<synchronous>, transform_indices = @transform_3, window_bounds = array<i64: 128, 485>}, {pipeline_mode = #tpu.pipeline_mode<synchronous>, transform_indices = @transform_4, window_bounds = array<i64: 64, 1>}, {pipeline_mode = #tpu.pipeline_mode<synchronous>, transform_indices = @transform_5, window_bounds = array<i64: 16, 64>}, {pipeline_mode = #tpu.pipeline_mode<synchronous>, transform_indices = @transform_6, window_bounds = array<i64: 8, 1>}, {transform_indices = @transform_7, window_bounds = array<i64: 1, 1, 128>}]} {
    %c0 = arith.constant 0 : index
    %c0_0 = arith.constant 0 : index
    %c0_1 = arith.constant 0 : index
    %0 = vector.load %arg2[%c0, %c0_0, %c0_1] : memref<1x485x128xf32, #tpu.memory_space<vmem>>, vector<1x485x128xf32>
    %1 = vector.shape_cast %0 : vector<1x485x128xf32> to vector<485x128xf32>
    %c0_2 = arith.constant 0 : index
    %c0_3 = arith.constant 0 : index
    %c0_4 = arith.constant 0 : index
    %c0_5 = arith.constant 0 : index
    %2 = vector.load %arg3[%c0_2, %c0_3, %c0_4, %c0_5] : memref<1x1x485x1xf32, #tpu.memory_space<vmem>>, vector<1x1x485x1xf32>
    %3 = vector.shape_cast %2 : vector<1x1x485x1xf32> to vector<485x1xf32>
    %c0_6 = arith.constant 0 : index
    %c0_7 = arith.constant 0 : index
    %c0_8 = arith.constant 0 : index
    %c0_9 = arith.constant 0 : index
    %4 = vector.load %arg4[%c0_6, %c0_7, %c0_8, %c0_9] : memref<1x1x485x1xf32, #tpu.memory_space<vmem>>, vector<1x1x485x1xf32>
    %5 = vector.shape_cast %4 : vector<1x1x485x1xf32> to vector<485x1xf32>
    %c0_10 = arith.constant 0 : index
    %c0_11 = arith.constant 0 : index
    %6 = vector.load %arg5[%c0_10, %c0_11] : memref<128x485xf32, #tpu.memory_space<vmem>>, vector<128x485xf32>
    %c0_12 = arith.constant 0 : index
    %c0_13 = arith.constant 0 : index
    %7 = vector.load %arg7[%c0_12, %c0_13] : memref<16x64xf32, #tpu.memory_space<vmem>>, vector<16x64xf32>
    %c0_14 = arith.constant 0 : index
    %c0_15 = arith.constant 0 : index
    %8 = vector.load %arg6[%c0_14, %c0_15] : memref<64x1xf32, #tpu.memory_space<vmem>>, vector<64x1xf32>
    %c0_16 = arith.constant 0 : index
    %c0_17 = arith.constant 0 : index
    %9 = vector.load %arg8[%c0_16, %c0_17] : memref<8x1xf32, #tpu.memory_space<vmem>>, vector<8x1xf32>
    %cst = arith.constant dense<0.000000e+00> : vector<128x128xf32>
    %10 = tpu.matmul %6, %1, %cst {dimension_numbers = #tpu.dot_dimension_numbers<[1], [0], [0], [1], [0, 0, 1, 1], [], []>} : vector<128x485xf32>, vector<485x128xf32>, vector<128x128xf32> -> vector<128x128xf32>
    %11 = vector.extract_strided_slice %10 {offsets = [0, 0], sizes = [64, 128], strides = [1, 1]} : vector<128x128xf32> to vector<64x128xf32>
    %12 = vector.extract_strided_slice %10 {offsets = [64, 0], sizes = [64, 128], strides = [1, 1]} : vector<128x128xf32> to vector<64x128xf32>
    %cst_18 = arith.constant dense<0.000000e+00> : vector<128x1xf32>
    %13 = tpu.matmul %6, %3, %cst_18 {dimension_numbers = #tpu.dot_dimension_numbers<[1], [0], [0], [1], [0, 0, 1, 1], [], []>} : vector<128x485xf32>, vector<485x1xf32>, vector<128x1xf32> -> vector<128x1xf32>
    %14 = vector.extract_strided_slice %13 {offsets = [0, 0], sizes = [64, 1], strides = [1, 1]} : vector<128x1xf32> to vector<64x1xf32>
    %cst_19 = arith.constant dense<0.000000e+00> : vector<128x1xf32>
    %15 = tpu.matmul %6, %5, %cst_19 {dimension_numbers = #tpu.dot_dimension_numbers<[1], [0], [0], [1], [0, 0, 1, 1], [], []>} : vector<128x485xf32>, vector<485x1xf32>, vector<128x1xf32> -> vector<128x1xf32>
    %16 = vector.extract_strided_slice %15 {offsets = [64, 0], sizes = [64, 1], strides = [1, 1]} : vector<128x1xf32> to vector<64x1xf32>
    %17 = tpu.iota {dimensions = array<i32: 1>} : vector<64x128xi32>
    %c128_i32 = arith.constant 128 : i32
    %18 = arith.muli %arg1, %c128_i32 : i32
    %c16_i32 = arith.constant 16 : i32
    %19 = arith.subi %c16_i32, %18 : i32
    %20 = vector.broadcast %19 : i32 to vector<64x128xi32>
    %21 = arith.cmpi slt, %17, %20 : vector<64x128xi32>
    %cst_20 = arith.constant 0.000000e+00 : f32
    %22 = vector.broadcast %cst_20 : f32 to vector<64x128xf32>
    %23 = arith.select %21, %12, %22 : vector<64x128xi1>, vector<64x128xf32>
    %c1_i32 = arith.constant 1 : i32
    %24 = tpu.dynamic_rotate %11 by %c1_i32 dim 1 : vector<64x128xf32>, i32 -> vector<64x128xf32>
    %c0_i32 = arith.constant 0 : i32
    %25 = vector.broadcast %c0_i32 : i32 to vector<64x128xi32>
    %26 = arith.cmpi eq, %17, %25 : vector<64x128xi32>
    %27 = vector.shape_cast %14 : vector<64x1xf32> to vector<64x1xf32>
    %28 = vector.broadcast %27 : vector<64x1xf32> to vector<64x128xf32>
    %29 = arith.select %26, %28, %24 : vector<64x128xi1>, vector<64x128xf32>
    %30 = arith.addf %29, %23 : vector<64x128xf32>
    %31 = vector.broadcast %8 : vector<64x1xf32> to vector<64x128xf32>
    %32 = arith.addf %30, %31 : vector<64x128xf32>
    %cst_21 = arith.constant 0.000000e+00 : f32
    %33 = vector.broadcast %cst_21 : f32 to vector<64x128xf32>
    %34 = arith.maximumf %32, %33 : vector<64x128xf32>
    %35 = vector.extract_strided_slice %24 {offsets = [0, 0], sizes = [64, 1], strides = [1, 1]} : vector<64x128xf32> to vector<64x1xf32>
    %36 = arith.addf %35, %16 : vector<64x1xf32>
    %37 = arith.addf %36, %8 : vector<64x1xf32>
    %cst_22 = arith.constant 0.000000e+00 : f32
    %38 = vector.broadcast %cst_22 : f32 to vector<64x1xf32>
    %39 = arith.maximumf %37, %38 : vector<64x1xf32>
    %cst_23 = arith.constant dense<0.000000e+00> : vector<16x128xf32>
    %40 = tpu.matmul %7, %34, %cst_23 {dimension_numbers = #tpu.dot_dimension_numbers<[1], [0], [0], [1], [0, 0, 1, 1], [], []>} : vector<16x64xf32>, vector<64x128xf32>, vector<16x128xf32> -> vector<16x128xf32>
    %41 = vector.extract_strided_slice %40 {offsets = [0, 0], sizes = [8, 128], strides = [1, 1]} : vector<16x128xf32> to vector<8x128xf32>
    %42 = vector.extract_strided_slice %40 {offsets = [8, 0], sizes = [8, 128], strides = [1, 1]} : vector<16x128xf32> to vector<8x128xf32>
    %cst_24 = arith.constant dense<0.000000e+00> : vector<16x1xf32>
    %43 = tpu.matmul %7, %39, %cst_24 {dimension_numbers = #tpu.dot_dimension_numbers<[1], [0], [0], [1], [0, 0, 1, 1], [], []>} : vector<16x64xf32>, vector<64x1xf32>, vector<16x1xf32> -> vector<16x1xf32>
    %44 = vector.extract_strided_slice %43 {offsets = [8, 0], sizes = [8, 1], strides = [1, 1]} : vector<16x1xf32> to vector<8x1xf32>
    %45 = tpu.iota {dimensions = array<i32: 1>} : vector<8x128xi32>
    %c127_i32 = arith.constant 127 : i32
    %46 = vector.broadcast %c127_i32 : i32 to vector<8x128xi32>
    %47 = arith.cmpi eq, %45, %46 : vector<8x128xi32>
    %c127_i32_25 = arith.constant 127 : i32
    %48 = tpu.dynamic_rotate %42 by %c127_i32_25 dim 1 : vector<8x128xf32>, i32 -> vector<8x128xf32>
    %49 = vector.shape_cast %44 : vector<8x1xf32> to vector<8x1xf32>
    %50 = vector.broadcast %49 : vector<8x1xf32> to vector<8x128xf32>
    %51 = arith.select %47, %50, %48 : vector<8x128xi1>, vector<8x128xf32>
    %52 = arith.addf %41, %51 : vector<8x128xf32>
    %53 = vector.broadcast %9 : vector<8x1xf32> to vector<8x128xf32>
    %54 = arith.addf %52, %53 : vector<8x128xf32>
    %cst_26 = arith.constant 0.000000e+00 : f32
    %55 = vector.broadcast %cst_26 : f32 to vector<8x128xf32>
    %56 = arith.maximumf %54, %55 : vector<8x128xf32>
    %57 = vector.extract_strided_slice %56 {offsets = [0, 0], sizes = [1, 128], strides = [1, 1]} : vector<8x128xf32> to vector<1x128xf32>
    %c0_27 = arith.constant 0 : index
    %c0_28 = arith.constant 0 : index
    %c0_29 = arith.constant 0 : index
    %58 = vector.load %arg9[%c0_27, %c0_28, %c0_29] : memref<1x1x128xf32, #tpu.memory_space<vmem>>, vector<1x1x128xf32>
    %59 = vector.shape_cast %58 : vector<1x1x128xf32> to vector<1x128xf32>
    %60 = vector.shape_cast %57 : vector<1x128xf32> to vector<1x1x128xf32>
    tpu.vector_store %arg9[%c0_27, %c0_28, %c0_29], %60 {strides = array<i32>} : memref<1x1x128xf32, #tpu.memory_space<vmem>>, vector<1x1x128xf32>,
    return
  }
  func.func @transform_0(%arg0: i32, %arg1: i32) -> (i32, i32, i32) {
    %c0_i32 = arith.constant 0 : i32
    %c0_i32_0 = arith.constant 0 : i32
    return %arg0, %c0_i32, %arg1 : i32, i32, i32
  }
  func.func @transform_1(%arg0: i32, %arg1: i32) -> (i32, i32, i32, i32) {
    %c0_i32 = arith.constant 0 : i32
    %c0_i32_0 = arith.constant 0 : i32
    %c0_i32_1 = arith.constant 0 : i32
    return %arg0, %arg1, %c0_i32, %c0_i32_0 : i32, i32, i32, i32
  }
  func.func @transform_2(%arg0: i32, %arg1: i32) -> (i32, i32, i32, i32) {
    %c0_i32 = arith.constant 0 : i32
    %c0_i32_0 = arith.constant 0 : i32
    %c0_i32_1 = arith.constant 0 : i32
    return %arg0, %arg1, %c0_i32, %c0_i32_0 : i32, i32, i32, i32
  }
  func.func @transform_3(%arg0: i32, %arg1: i32) -> (i32, i32) {
    %c0_i32 = arith.constant 0 : i32
    %c0_i32_0 = arith.constant 0 : i32
    %c0_i32_1 = arith.constant 0 : i32
    return %c0_i32, %c0_i32_0 : i32, i32
  }
  func.func @transform_4(%arg0: i32, %arg1: i32) -> (i32, i32) {
    %c0_i32 = arith.constant 0 : i32
    %c0_i32_0 = arith.constant 0 : i32
    %c0_i32_1 = arith.constant 0 : i32
    return %c0_i32, %c0_i32_0 : i32, i32
  }
  func.func @transform_5(%arg0: i32, %arg1: i32) -> (i32, i32) {
    %c0_i32 = arith.constant 0 : i32
    %c0_i32_0 = arith.constant 0 : i32
    %c0_i32_1 = arith.constant 0 : i32
    return %c0_i32, %c0_i32_0 : i32, i32
  }
  func.func @transform_6(%arg0: i32, %arg1: i32) -> (i32, i32) {
    %c0_i32 = arith.constant 0 : i32
    %c0_i32_0 = arith.constant 0 : i32
    %c0_i32_1 = arith.constant 0 : i32
    return %c0_i32, %c0_i32_0 : i32, i32
  }
  func.func @transform_7(%arg0: i32, %arg1: i32) -> (i32, i32, i32) {
    %c0_i32 = arith.constant 0 : i32
    %c0_i32_0 = arith.constant 0 : i32
    return %arg0, %c0_i32, %arg1 : i32, i32, i32
  }
}

</mosaic_0001>

<bundles_post_ra>
// kernel: model_forward.1
= control target key start
LH: loop header
LB: loop body
LE: loop exit
PB: predicated region body
PF: predicated region fallthrough
CT: control target
= control target key end

     0   :  { %12 = vsyncpa [#allocation3], 0  ;;  %s3754_s0 = inlined_call_operand.vmem [shape: f32[2,485,16], index: 0, kind: input, shape index: {}]   ;;  %s3755_s1 = inlined_call_operand.vmem [shape: f32[2,1,485,1], index: 1, kind: input, shape index: {}, may-alias: {1,2}]   ;;  %s3756_s2 = inlined_call_operand.vmem [shape: f32[2,1,485,1], index: 2, kind: input, shape index: {}, may-alias: {1,2}]   ;;  %s3757_s3 = inlined_call_operand.vmem [shape: f32[128,485], index: 3, kind: input, shape index: {}]   ;;  %s3758_s4 = inlined_call_operand.vmem [shape: f32[64,1], index: 4, kind: input, shape index: {}]   ;;  %s3759_s5 = inlined_call_operand.vmem [shape: f32[16,64], index: 5, kind: input, shape index: {}]   ;;  %s3760_s6 = inlined_call_operand.vmem [shape: f32[8,1], index: 6, kind: input, shape index: {}]   ;;  %s3761_s7 = inlined_call_operand.hbm [shape: f32[2,1,16], index: 7, kind: output, shape index: {}]  }
   0x1   :  { %14 = vsyncpa [#allocation3 + $0x1], 0  ;;  %s2548_s24 = smov 0   ;;  %s2550_s25 = smov 0  }
   0x2   :  { %s2552_s26 = smov 0   ;;  %s2554_s27 = smov 0  }
   0x3   :  { %s2556_s28 = smov 0   ;;  %s2558_s29 = smov 0  }
   0x4 LB: > { %s1991_s30 = sadd.s32 4294967295, %s2501_s29   ;;  %s1992_s8 = sadd.s32 4294967294, %s2501_s29   ;;  %s2501_s29 = sphi %s2558_s29, %s20_s29   ;;  %s2497_s28 = sphi %s2556_s28, %s3804_s28   ;;  %s2493_s27 = sphi %s2554_s27, %s3803_s27   ;;  %s2489_s26 = sphi %s2552_s26, %s3802_s26   ;;  %s2485_s25 = sphi %s2550_s25, %s3801_s25   ;;  %s2481_s24 = sphi %s2548_s24, %s3800_s24  }
   0x5   : > { %s32_s9 = sadd.s32 1, %s2497_s28  ;;  %s209_s10 = sadd.s32 1, %s2489_s26 }
   0x6   : > { %p34_p0 = scmp.ge.s32.totalorder %s32_s9, 2  ;;  %p219_p1 = scmp.ne.s32.totalorder %s2489_s26, %s2485_s25 }
   0x7   : > { %p220_p2 = scmp.eq.s32.totalorder %s1991_s30, 1  ;;  %p225_p3 = scmp.ne.s32.totalorder %s2485_s25, %s2481_s24 }
   0x8   : > { %s3806_s9 = smov (%p34_p0, %s32_s9), 0  ;;  %p226_p5 = scmp.eq.s32.totalorder %s1992_s8, 1 }
   0x9   : > { %p2588_p4 = por %p220_p2, %p219_p1  ;;  %s204_s12 = ssub.s32 %s2497_s28, %s3806_s9 }
   0xa   : > { %p1995_p6 = scmp.ge.s32.totalorder %s2501_s29, 1  ;;  %p207_p7 = scmp.eq.s32.totalorder %s204_s12, 0 }
   0xb   : > { %p2595_p8 = por %p226_p5, %p225_p3  ;;  %p291_p9 = scmp.lt.s32.totalorder %s2501_s29, 3 }
   0xc   : > { %s2601_s14 = scalar_select %p207_p7, %s2489_s26, %s209_s10  }
   0xd   : > { %p292_p10 = pnand %p1995_p6, %p291_p9 }
   0xf   : > { %295 = sbr.rel (%p292_p10) target bundleno = 882 (0x372), region = 48 }
  0x14   : > { %p343_p11 = scmp.lt.s32.totalorder %s2493_s27, 1  ;;  %v2607_v0 = vld [vmem:[%s3757_s3 + $0x8] sm:$0xff]  ;;  %v3762_v1 = vmov 0.0   ;;  %v2614_v2 = vld [vmem:[%s3757_s3 + $0x18] sm:$0xff]  ;;  %vm627_vm0 = vcmask 826368   ;;  %vm676_vm1 = vcmask 1044480  }
  0x15   : > { %825 = vmatprep.subr.mxu1 %v3762_v1  ;;  %744 = vmatprep.mubr.f32.mxu0 %v2607_v0  ;;  %v2697_v53 = vld [vmem:[%s3757_s3] sm:$0xff]  ;;  %v2704_v55 = vld [vmem:[%s3757_s3 + $0x28] sm:$0xff]  ;;  %s2505_s21 = smov 1   ;;  %vm1691_vm2 = vcmask 523264  }
  0x16   : > { %s344_s19 = scalar_select %p343_p11, %s2493_s27, 1  ;;  %2000 = vmatprep.mubr.msk.f32.mxu1 %vm627_vm0, %v2614_v2  ;;  %v2721_v59 = vld [vmem:[%s3757_s3 + $0x20] sm:$0xff]  ;;  %v2728_v61 = vld [vmem:[%s3757_s3 + $0x48] sm:$0xff] }
  0x18   : > { %s2619_s20 = smul.u32 488, %s344_s19  ;;  %s2507_s19 = smov [#allocation2]  }
  0x1a   : > { %s2625_s23 = scalar_lea.vmem %s3754_s0, %s2619_s20  ;;  %s2710_s17 = scalar_lea.vmem %s3755_s1, %s2619_s20 }
  0x1b   : > { %v416_v3 = vld [vmem:[%s2625_s23 + $0x178] sm:$0xff]  ;;  %v415_v4 = vld [vmem:[%s2625_s23 + $0x170] sm:$0xff]  ;;  %v414_v5 = vld [vmem:[%s2625_s23 + $0x168] sm:$0xff]  ;;  %s3207_s22 = scalar_lea.vmem %s3756_s2, %s2619_s20  ;;  %s2506_s20 = smov 127  }
  0x1c   : > { %826 = vmatpush1.msra.mxu1 %v416_v3  ;;  %v400_v6 = vld [vmem:[%s2625_s23 + $0xf8] sm:$0xff]  ;;  %v413_v8 = vld [vmem:[%s2625_s23 + $0x160] sm:$0xff]  ;;  %v399_v9 = vld [vmem:[%s2625_s23 + $0xf0] sm:$0xff] }
  0x1d   : > { %827 = vmatprep.subr.mxu1 %v3762_v1  ;;  %v384_v7 = vld [vmem:[%s2625_s23 + $0x78] sm:$0xff]  ;;  %2057 = vmatprep.subr.mxu0 %v400_v6  ;;  %v383_v10 = vld [vmem:[%s2625_s23 + $0x70] sm:$0xff]  ;;  %v398_v11 = vld [vmem:[%s2625_s23 + $0xe8] sm:$0xff] }
  0x1e   : > { %828 = vmatpush1.msra.mxu1 %v415_v4  ;;  %2058 = vmatpush3.msra.mxu0 %v384_v7  ;;  %v412_v12 = vld [vmem:[%s2625_s23 + $0x158] sm:$0xff]  ;;  %v382_v13 = vld [vmem:[%s2625_s23 + $0x68] sm:$0xff]  ;;  %v397_v14 = vld [vmem:[%s2625_s23 + $0xe0] sm:$0xff] }
  0x1f   : > { %829 = vmatprep.subr.mxu1 %v3762_v1  ;;  %2059 = vmatprep.subr.mxu0 %v399_v9  ;;  %v411_v15 = vld [vmem:[%s2625_s23 + $0x150] sm:$0xff]  ;;  %v381_v16 = vld [vmem:[%s2625_s23 + $0x60] sm:$0xff]  ;;  %v396_v17 = vld [vmem:[%s2625_s23 + $0xd8] sm:$0xff] }
  0x20   : > { %830 = vmatpush1.msra.mxu1 %v414_v5  ;;  %2060 = vmatpush3.msra.mxu0 %v383_v10  ;;  %v410_v18 = vld [vmem:[%s2625_s23 + $0x148] sm:$0xff]  ;;  %v380_v19 = vld [vmem:[%s2625_s23 + $0x58] sm:$0xff]  ;;  %v395_v20 = vld [vmem:[%s2625_s23 + $0xd0] sm:$0xff] }
  0x21   : > { %831 = vmatprep.subr.mxu1 %v3762_v1  ;;  %2061 = vmatprep.subr.mxu0 %v398_v11  ;;  %v409_v21 = vld [vmem:[%s2625_s23 + $0x140] sm:$0xff]  ;;  %v379_v22 = vld [vmem:[%s2625_s23 + $0x50] sm:$0xff]  ;;  %v394_v23 = vld [vmem:[%s2625_s23 + $0xc8] sm:$0xff] }
  0x22   : > { %832 = vmatpush1.msra.mxu1 %v413_v8  ;;  %2062 = vmatpush3.msra.mxu0 %v382_v13  ;;  %v408_v24 = vld [vmem:[%s2625_s23 + $0x138] sm:$0xff]  ;;  %v378_v25 = vld [vmem:[%s2625_s23 + $0x48] sm:$0xff]  ;;  %v393_v26 = vld [vmem:[%s2625_s23 + $0xc0] sm:$0xff] }
  0x23   : > { %833 = vmatprep.subr.mxu1 %v3762_v1  ;;  %2063 = vmatprep.subr.mxu0 %v397_v14  ;;  %v407_v27 = vld [vmem:[%s2625_s23 + $0x130] sm:$0xff]  ;;  %v377_v28 = vld [vmem:[%s2625_s23 + $0x40] sm:$0xff]  ;;  %v392_v29 = vld [vmem:[%s2625_s23 + $0xb8] sm:$0xff] }
  0x24   : > { %834 = vmatpush1.msra.mxu1 %v412_v12  ;;  %2064 = vmatpush3.msra.mxu0 %v381_v16  ;;  %v406_v30 = vld [vmem:[%s2625_s23 + $0x128] sm:$0xff]  ;;  %v376_v31 = vld [vmem:[%s2625_s23 + $0x38] sm:$0xff]  ;;  %v391_v32 = vld [vmem:[%s2625_s23 + $0xb0] sm:$0xff] }
  0x25   : > { %835 = vmatprep.subr.mxu1 %v3762_v1  ;;  %2065 = vmatprep.subr.mxu0 %v396_v17  ;;  %v405_v33 = vld [vmem:[%s2625_s23 + $0x120] sm:$0xff]  ;;  %v375_v34 = vld [vmem:[%s2625_s23 + $0x30] sm:$0xff]  ;;  %v390_v35 = vld [vmem:[%s2625_s23 + $0xa8] sm:$0xff] }
  0x26   : > { %836 = vmatpush1.msra.mxu1 %v411_v15  ;;  %2066 = vmatpush3.msra.mxu0 %v380_v19  ;;  %v404_v36 = vld [vmem:[%s2625_s23 + $0x118] sm:$0xff]  ;;  %v374_v37 = vld [vmem:[%s2625_s23 + $0x28] sm:$0xff]  ;;  %v389_v38 = vld [vmem:[%s2625_s23 + $0xa0] sm:$0xff] }
  0x27   : > { %837 = vmatprep.subr.mxu1 %v3762_v1  ;;  %2067 = vmatprep.subr.mxu0 %v395_v20  ;;  %v403_v39 = vld [vmem:[%s2625_s23 + $0x110] sm:$0xff]  ;;  %v373_v40 = vld [vmem:[%s2625_s23 + $0x20] sm:$0xff]  ;;  %v388_v41 = vld [vmem:[%s2625_s23 + $0x98] sm:$0xff] }
  0x28   : > { %838 = vmatpush1.msra.mxu1 %v410_v18  ;;  %2068 = vmatpush3.msra.mxu0 %v379_v22  ;;  %v402_v42 = vld [vmem:[%s2625_s23 + $0x108] sm:$0xff]  ;;  %v372_v43 = vld [vmem:[%s2625_s23 + $0x18] sm:$0xff]  ;;  %v387_v44 = vld [vmem:[%s2625_s23 + $0x90] sm:$0xff] }
  0x29   : > { %839 = vmatprep.subr.mxu1 %v3762_v1  ;;  %2069 = vmatprep.subr.mxu0 %v394_v23  ;;  %v401_v45 = vld [vmem:[%s2625_s23 + $0x100] sm:$0xff]  ;;  %v371_v46 = vld [vmem:[%s2625_s23 + $0x10] sm:$0xff]  ;;  %v386_v47 = vld [vmem:[%s2625_s23 + $0x88] sm:$0xff] }
  0x2a   : > { %840 = vmatpush1.msra.mxu1 %v409_v21  ;;  %2070 = vmatpush3.msra.mxu0 %v378_v25  ;;  %v429_v48 = vld [vmem:[%s2625_s23 + $0x1e0] sm:$0x1f]  ;;  %v370_v49 = vld [vmem:[%s2625_s23 + $0x8] sm:$0xff]  ;;  %v428_v51 = vld [vmem:[%s2625_s23 + $0x1d8] sm:$0xff] }
  0x2b   : > { %841 = vmatprep.subr.mxu1 %v3762_v1  ;;  %2071 = vmatprep.subr.mxu0 %v393_v26  ;;  %v385_v50 = vld [vmem:[%s2625_s23 + $0x80] sm:$0xff]  ;;  %v427_v54 = vld [vmem:[%s2625_s23 + $0x1d0] sm:$0xff]  ;;  %v461_v56 = vld [vmem:[%s2710_s17 + $0xf8] sm:$0xff] }
  0x2c   : > { %842 = vmatpush1.msra.mxu1 %v408_v24  ;;  %2072 = vmatpush3.msra.mxu0 %v377_v28  ;;  %v369_v52 = vld [vmem:[%s2625_s23] sm:$0xff]  ;;  %v426_v57 = vld [vmem:[%s2625_s23 + $0x1c8] sm:$0xff]  ;;  %v445_v58 = vld [vmem:[%s2710_s17 + $0x78] sm:$0xff] }
  0x2d   : > { %843 = vmatprep.subr.mxu1 %v3762_v1  ;;  %2073 = vmatprep.subr.mxu0 %v392_v29  ;;  %v425_v60 = vld [vmem:[%s2625_s23 + $0x1c0] sm:$0xff]  ;;  %v460_v62 = vld [vmem:[%s2710_s17 + $0xf0] sm:$0xff]  ;;  %v424_v63 = vld [vmem:[%s2625_s23 + $0x1b8] sm:$0xff] }
  0x2e   : > { %844 = vmatpush1.msra.mxu1 %v407_v27  ;;  %2074 = vmatpush3.msra.mxu0 %v376_v31  ;;  %v444_v3 = vld [vmem:[%s2710_s17 + $0x70] sm:$0xff]  ;;  %v2739_v4 = vld [vmem:[%s3757_s3 + $0x40] sm:$0xff]  ;;  %v2746_v6 = vld [vmem:[%s3757_s3 + $0x68] sm:$0xff] }
  0x2f   : > { %845 = vmatprep.subr.mxu1 %v3762_v1  ;;  %2075 = vmatprep.subr.mxu0 %v391_v32  ;;  %v423_v5 = vld [vmem:[%s2625_s23 + $0x1b0] sm:$0xff]  ;;  %v459_v7 = vld [vmem:[%s2710_s17 + $0xe8] sm:$0xff]  ;;  %v2757_v10 = vld [vmem:[%s3757_s3 + $0x60] sm:$0xff] }
  0x30   : > { %846 = vmatpush1.msra.mxu1 %v406_v30  ;;  %2076 = vmatpush3.msra.mxu0 %v375_v34  ;;  %v422_v8 = vld [vmem:[%s2625_s23 + $0x1a8] sm:$0xff]  ;;  %v421_v11 = vld [vmem:[%s2625_s23 + $0x1a0] sm:$0xff]  ;;  %v420_v14 = vld [vmem:[%s2625_s23 + $0x198] sm:$0xff] }
  0x31   : > { %847 = vmatprep.subr.mxu1 %v3762_v1  ;;  %2077 = vmatprep.subr.mxu0 %v390_v35  ;;  %v443_v9 = vld [vmem:[%s2710_s17 + $0x68] sm:$0xff]  ;;  %v458_v13 = vld [vmem:[%s2710_s17 + $0xe0] sm:$0xff]  ;;  %v419_v17 = vld [vmem:[%s2625_s23 + $0x190] sm:$0xff] }
  0x32   : > { %848 = vmatpush1.msra.mxu1 %v405_v33  ;;  %2078 = vmatpush3.msra.mxu0 %v374_v37  ;;  %v2764_v12 = vld [vmem:[%s3757_s3 + $0x88] sm:$0xff]  ;;  %v442_v15 = vld [vmem:[%s2710_s17 + $0x60] sm:$0xff]  ;;  %v457_v19 = vld [vmem:[%s2710_s17 + $0xd8] sm:$0xff] }
  0x33   : > { %849 = vmatprep.subr.mxu1 %v3762_v1  ;;  %2079 = vmatprep.subr.mxu0 %v389_v38  ;;  %v2775_v16 = vld [vmem:[%s3757_s3 + $0x80] sm:$0xff]  ;;  %v2782_v18 = vld [vmem:[%s3757_s3 + $0xa8] sm:$0xff]  ;;  %v441_v21 = vld [vmem:[%s2710_s17 + $0x58] sm:$0xff] }
  0x34   : > { %850 = vmatpush1.msra.mxu1 %v404_v36  ;;  %2080 = vmatpush3.msra.mxu0 %v373_v40  ;;  %v418_v20 = vld [vmem:[%s2625_s23 + $0x188] sm:$0xff]  ;;  %v2793_v22 = vld [vmem:[%s3757_s3 + $0xa0] sm:$0xff]  ;;  %v2805_v25 = vld [vmem:[%s3757_s3 + $0x10] sm:$0xff] }
  0x35   : > { %851 = vmatprep.subr.mxu1 %v3762_v1  ;;  %2081 = vmatprep.subr.mxu0 %v388_v41  ;;  %v417_v23 = vld [vmem:[%s2625_s23 + $0x180] sm:$0xff]  ;;  %v2800_v24 = vld [vmem:[%s3757_s3 + $0xc8] sm:$0xff]  ;;  %v2811_v26 = vld [vmem:[%s3757_s3 + $0x38] sm:$0xff]  ;;  %s2054_s23 = sshll.u32 %s2493_s27, 4 }
  0x36   : > { %852 = vmatpush1.msra.mxu1 %v403_v39  ;;  %2082 = vmatpush3.msra.mxu0 %v372_v43  ;;  %v477_v27 = vld [vmem:[%s2710_s17 + $0x178] sm:$0xff]  ;;  %v2819_v28 = vld [vmem:[%s3757_s3 + $0xc0] sm:$0xff]  ;;  %v476_v29 = vld [vmem:[%s2710_s17 + $0x170] sm:$0xff]  ;;  %s1877_s15 = scalar_lea.hbm %s3761_s7, %s2054_s23 }
  0x37   : > { %853 = vmatprep.subr.mxu1 %v3762_v1  ;;  %2083 = vmatprep.subr.mxu0 %v387_v44  ;;  %v2827_v30 = vld [vmem:[%s3757_s3 + $0xe8] sm:$0xff]  ;;  %v2834_v31 = vld [vmem:[%s3757_s3 + $0x30] sm:$0xff]  ;;  %v2839_v32 = vld [vmem:[%s3757_s3 + $0x58] sm:$0xff] }
  0x38   : > { %854 = vmatpush1.msra.mxu1 %v402_v42  ;;  %2084 = vmatpush3.msra.mxu0 %v371_v46  ;;  %v475_v33 = vld [vmem:[%s2710_s17 + $0x168] sm:$0xff]  ;;  %v2848_v34 = vld [vmem:[%s3757_s3 + $0xe0] sm:$0xff]  ;;  %v2863_v37 = vld [vmem:[%s3757_s3 + $0x50] sm:$0xff] }
  0x39   : > { %855 = vmatprep.subr.mxu1 %v3762_v1  ;;  %2085 = vmatprep.subr.mxu0 %v386_v47  ;;  %v474_v35 = vld [vmem:[%s2710_s17 + $0x160] sm:$0xff]  ;;  %v2856_v36 = vld [vmem:[%s3757_s3 + $0x108] sm:$0xff]  ;;  %v2868_v38 = vld [vmem:[%s3757_s3 + $0x78] sm:$0xff] }
  0x3a   : > { %856 = vmatpush1.msra.mxu1 %v401_v45  ;;  %2086 = vmatpush3.msra.mxu0 %v370_v49  ;;  %v473_v39 = vld [vmem:[%s2710_s17 + $0x158] sm:$0xff]  ;;  %v2877_v40 = vld [vmem:[%s3757_s3 + $0x100] sm:$0xff]  ;;  %v472_v41 = vld [vmem:[%s2710_s17 + $0x150] sm:$0xff] }
  0x3b   : > { %863 = vmatprep.subr.mxu1 %v3762_v1  ;;  %2087 = vmatprep.subr.mxu0 %v385_v50  ;;  %v2885_v42 = vld [vmem:[%s3757_s3 + $0x128] sm:$0xff]  ;;  %v2892_v43 = vld [vmem:[%s3757_s3 + $0x70] sm:$0xff]  ;;  %v2897_v44 = vld [vmem:[%s3757_s3 + $0x98] sm:$0xff] }
  0x3c   : > { %1999 = vmatpush2.msk.msra.mxu1 %vm676_vm1, %v429_v48  ;;  %2088 = vmatpush3.msra.mxu0 %v369_v52  ;;  %v471_v45 = vld [vmem:[%s2710_s17 + $0x148] sm:$0xff]  ;;  %v2906_v46 = vld [vmem:[%s3757_s3 + $0x120] sm:$0xff]  ;;  %v2921_v49 = vld [vmem:[%s3757_s3 + $0x90] sm:$0xff] }
  0x3d   : > { %865 = vmatprep.subr.mxu1 %v3762_v1  ;;  %745 = vmatmul.mubr.f32.vlgmr.msra.gmra.mxu0 %v2697_v53  ;;  %v470_v47 = vld [vmem:[%s2710_s17 + $0x140] sm:$0xff]  ;;  %v2914_v48 = vld [vmem:[%s3757_s3 + $0x148] sm:$0xff]  ;;  %v2926_v50 = vld [vmem:[%s3757_s3 + $0xb8] sm:$0xff] }
  0x3e   : > { %866 = vmatpush2.msra.mxu1 %v428_v51  ;;  %749 = vmatprep.mubr.f32.mxu0 %v2704_v55  ;;  %v469_v51 = vld [vmem:[%s2710_s17 + $0x138] sm:$0xff]  ;;  %v2935_v52 = vld [vmem:[%s3757_s3 + $0x140] sm:$0xff] }
  0x3f   : > { %867 = vmatprep.subr.mxu1 %v3762_v1  ;;  %2137 = vmatprep.subr.mxu0 %v461_v56  ;;  %v456_v56 = vld [vmem:[%s2710_s17 + $0xd0] sm:$0xff] }
  0x40   : > { %868 = vmatpush2.msra.mxu1 %v427_v54  ;;  %2138 = vmatpush3.msra.mxu0 %v445_v58  ;;  %v468_v54 = vld [vmem:[%s2710_s17 + $0x130] sm:$0xff]  ;;  %v2951_v58 = vld [vmem:[%s3757_s3 + $0xd8] sm:$0xff] }
  0x41   : > { %869 = vmatprep.subr.mxu1 %v3762_v1  ;;  %750 = vmatmul.mubr.f32.gmra.mxu0 %v2721_v59 }
  0x42   : > { %870 = vmatpush2.msra.mxu1 %v426_v57  ;;  %754 = vmatprep.mubr.f32.mxu0 %v2728_v61  ;;  %v2946_v57 = vld [vmem:[%s3757_s3 + $0xb0] sm:$0xff] }
  0x43   : > { %871 = vmatprep.subr.mxu1 %v3762_v1  ;;  %2139 = vmatprep.subr.mxu0 %v460_v62  ;;  %v2959_v62 = vld [vmem:[%s3757_s3 + $0x168] sm:$0xff] }
  0x44   : > { %872 = vmatpush2.msra.mxu1 %v425_v60  ;;  %2140 = vmatpush3.msra.mxu0 %v444_v3  ;;  %v467_v60 = vld [vmem:[%s2710_s17 + $0x128] sm:$0xff]  ;;  %v440_v3 = vld [vmem:[%s2710_s17 + $0x50] sm:$0xff] }
  0x45   : > { %873 = vmatprep.subr.mxu1 %v3762_v1  ;;  %755 = vmatmul.mubr.f32.gmra.mxu0 %v2739_v4 }
  0x46   : > { %874 = vmatpush2.msra.mxu1 %v424_v63  ;;  %759 = vmatprep.mubr.f32.mxu0 %v2746_v6  ;;  %v466_v63 = vld [vmem:[%s2710_s17 + $0x120] sm:$0xff] }
  0x47   : > { %875 = vmatprep.subr.mxu1 %v3762_v1  ;;  %2141 = vmatprep.subr.mxu0 %v459_v7  ;;  %v2975_v7 = vld [vmem:[%s3757_s3 + $0xf8] sm:$0xff] }
  0x48   : > { %876 = vmatpush2.msra.mxu1 %v423_v5  ;;  %2142 = vmatpush3.msra.mxu0 %v443_v9  ;;  %v2970_v5 = vld [vmem:[%s3757_s3 + $0xd0] sm:$0xff]  ;;  %v2983_v9 = vld [vmem:[%s3757_s3 + $0x160] sm:$0xff] }
  0x49   : > { %877 = vmatprep.subr.mxu1 %v3762_v1  ;;  %760 = vmatmul.mubr.f32.gmra.mxu0 %v2757_v10 }
  0x4a   : > { %878 = vmatpush2.msra.mxu1 %v422_v8  ;;  %764 = vmatprep.mubr.f32.mxu0 %v2764_v12  ;;  %v465_v8 = vld [vmem:[%s2710_s17 + $0x118] sm:$0xff] }
  0x4b   : > { %879 = vmatprep.subr.mxu1 %v3762_v1  ;;  %2143 = vmatprep.subr.mxu0 %v458_v13  ;;  %v455_v13 = vld [vmem:[%s2710_s17 + $0xc8] sm:$0xff] }
  0x4c   : > { %880 = vmatpush2.msra.mxu1 %v421_v11  ;;  %2144 = vmatpush3.msra.mxu0 %v442_v15  ;;  %v464_v11 = vld [vmem:[%s2710_s17 + $0x110] sm:$0xff]  ;;  %v2999_v15 = vld [vmem:[%s3757_s3 + $0x118] sm:$0xff] }
  0x4d   : > { %881 = vmatprep.subr.mxu1 %v3762_v1  ;;  %765 = vmatmul.mubr.f32.gmra.mxu0 %v2775_v16 }
  0x4e   : > { %882 = vmatpush2.msra.mxu1 %v420_v14  ;;  %769 = vmatprep.mubr.f32.mxu0 %v2782_v18  ;;  %v2994_v14 = vld [vmem:[%s3757_s3 + $0xf0] sm:$0xff] }
  0x4f   : > { %883 = vmatprep.subr.mxu1 %v3762_v1  ;;  %2145 = vmatprep.subr.mxu0 %v457_v19  ;;  %v439_v19 = vld [vmem:[%s2710_s17 + $0x48] sm:$0xff] }
  0x50   : > { %884 = vmatpush2.msra.mxu1 %v419_v17  ;;  %2146 = vmatpush3.msra.mxu0 %v441_v21  ;;  %v463_v17 = vld [vmem:[%s2710_s17 + $0x108] sm:$0xff]  ;;  %v454_v21 = vld [vmem:[%s2710_s17 + $0xc0] sm:$0xff] }
  0x51   : > { %885 = vmatprep.subr.mxu1 %v3762_v1  ;;  %770 = vmatmul.mubr.f32.gmra.mxu0 %v2793_v22 }
  0x52   : > { %886 = vmatpush2.msra.mxu1 %v418_v20  ;;  %774 = vmatprep.mubr.f32.mxu0 %v2800_v24  ;;  %v462_v20 = vld [vmem:[%s2710_s17 + $0x100] sm:$0xff] }
  0x53   : > { %887 = vmatprep.subr.mxu1 %v3762_v1  ;;  %2147 = vmatprep.subr.mxu0 %v456_v56  ;;  %v488_v56 = vld [vmem:[%s2710_s17 + $0x1d0] sm:$0xff] }
  0x54   : > { %888 = vmatpush2.msra.mxu1 %v417_v23  ;;  %2148 = vmatpush3.msra.mxu0 %v440_v3  ;;  %v3014_v23 = vld [vmem:[%s3757_s3 + $0x110] sm:$0xff]  ;;  %v3069_v3 = vld [vmem:[%s3757_s3 + $0x178] sm:$0xff] }
  0x55   : > { %890 = vmatmul.mubr.f32.vlgmr.msra.gmra.mxu1 %v2805_v25  ;;  %1110 = vmatprep.subr.mxu1 %v3762_v1 }
  0x56   : > { %2001 = vmatprep.mubr.msk.f32.mxu1 %vm627_vm0, %v2811_v26  ;;  %1111 = vmatpush1.msra.mxu1 %v477_v27  ;;  %v3019_v27 = vld [vmem:[%s3757_s3 + $0x138] sm:$0xff] }
  0x57   : > { %1112 = vmatprep.subr.mxu1 %v3762_v1  ;;  %775 = vmatmul.mubr.f32.gmra.mxu0 %v2819_v28 }
  0x58   : > { %1113 = vmatpush1.msra.mxu1 %v476_v29  ;;  %779 = vmatprep.mubr.f32.mxu0 %v2827_v30  ;;  %v490_v29 = vld [vmem:[%s2710_s17 + $0x1e0] sm:$0x1f] }
  0x59   : > { %895 = vmatmul.mubr.f32.gmra.mxu1 %v2834_v31  ;;  %1114 = vmatprep.subr.mxu1 %v3762_v1 }
  0x5a   : > { %2002 = vmatprep.mubr.msk.f32.mxu1 %vm627_vm0, %v2839_v32  ;;  %1115 = vmatpush1.msra.mxu1 %v475_v33  ;;  %v3026_v33 = vld [vmem:[%s3757_s3 + $0x188] sm:$0xff] }
  0x5b   : > { %1116 = vmatprep.subr.mxu1 %v3762_v1  ;;  %780 = vmatmul.mubr.f32.gmra.mxu0 %v2848_v34 }
  0x5c   : > { %1117 = vmatpush1.msra.mxu1 %v474_v35  ;;  %784 = vmatprep.mubr.f32.mxu0 %v2856_v36  ;;  %v438_v35 = vld [vmem:[%s2710_s17 + $0x40] sm:$0xff] }
  0x5d   : > { %900 = vmatmul.mubr.f32.gmra.mxu1 %v2863_v37  ;;  %1118 = vmatprep.subr.mxu1 %v3762_v1 }
  0x5e   : > { %2003 = vmatprep.mubr.msk.f32.mxu1 %vm627_vm0, %v2868_v38  ;;  %1119 = vmatpush1.msra.mxu1 %v473_v39  ;;  %v489_v39 = vld [vmem:[%s2710_s17 + $0x1d8] sm:$0xff] }
  0x5f   : > { %1120 = vmatprep.subr.mxu1 %v3762_v1  ;;  %785 = vmatmul.mubr.f32.gmra.mxu0 %v2877_v40 }
  0x60   : > { %1121 = vmatpush1.msra.mxu1 %v472_v41  ;;  %789 = vmatprep.mubr.f32.mxu0 %v2885_v42  ;;  %v3037_v41 = vld [vmem:[%s3757_s3 + $0x130] sm:$0xff] }
  0x61   : > { %905 = vmatmul.mubr.f32.gmra.mxu1 %v2892_v43  ;;  %1122 = vmatprep.subr.mxu1 %v3762_v1 }
  0x62   : > { %2004 = vmatprep.mubr.msk.f32.mxu1 %vm627_vm0, %v2897_v44  ;;  %1123 = vmatpush1.msra.mxu1 %v471_v45  ;;  %v3043_v45 = vld [vmem:[%s3757_s3 + $0x180] sm:$0xff] }
  0x63   : > { %1124 = vmatprep.subr.mxu1 %v3762_v1  ;;  %790 = vmatmul.mubr.f32.gmra.mxu0 %v2906_v46 }
  0x64   : > { %1125 = vmatpush1.msra.mxu1 %v470_v47  ;;  %794 = vmatprep.mubr.f32.mxu0 %v2914_v48  ;;  %v3048_v47 = vld [vmem:[%s3757_s3 + $0x158] sm:$0xff] }
  0x65   : > { %910 = vmatmul.mubr.f32.gmra.mxu1 %v2921_v49  ;;  %1126 = vmatprep.subr.mxu1 %v3762_v1 }
  0x66   : > { %2005 = vmatprep.mubr.msk.f32.mxu1 %vm627_vm0, %v2926_v50  ;;  %1127 = vmatpush1.msra.mxu1 %v469_v51  ;;  %v453_v51 = vld [vmem:[%s2710_s17 + $0xb8] sm:$0xff] }
  0x67   : > { %1128 = vmatprep.subr.mxu1 %v3762_v1  ;;  %795 = vmatmul.mubr.f32.gmra.mxu0 %v2935_v52 }
  0x68   : > { %1129 = vmatpush1.msra.mxu1 %v468_v54  ;;  %799 = vmatprep.mubr.f32.mxu0 %v2959_v62  ;;  %v437_v54 = vld [vmem:[%s2710_s17 + $0x38] sm:$0xff] }
  0x69   : > { %915 = vmatmul.mubr.f32.gmra.mxu1 %v2946_v57  ;;  %1130 = vmatprep.subr.mxu1 %v3762_v1 }
  0x6a   : > { %2006 = vmatprep.mubr.msk.f32.mxu1 %vm627_vm0, %v2951_v58  ;;  %1131 = vmatpush1.msra.mxu1 %v467_v60  ;;  %v452_v60 = vld [vmem:[%s2710_s17 + $0xb0] sm:$0xff] }
  0x6b   : > { %1132 = vmatprep.subr.mxu1 %v3762_v1  ;;  %800 = vmatmul.mubr.f32.gmra.mxu0 %v2983_v9 }
  0x6c   : > { %1133 = vmatpush1.msra.mxu1 %v466_v63  ;;  %2149 = vmatprep.subr.mxu0 %v455_v13  ;;  %v3063_v63 = vld [vmem:[%s3757_s3 + $0x150] sm:$0xff]  ;;  %v487_v13 = vld [vmem:[%s2710_s17 + $0x1c8] sm:$0xff] }
  0x6d   : > { %920 = vmatmul.mubr.f32.gmra.mxu1 %v2970_v5  ;;  %1134 = vmatprep.subr.mxu1 %v3762_v1 }
  0x6e   : > { %2007 = vmatprep.mubr.msk.f32.mxu1 %vm627_vm0, %v2975_v7  ;;  %1135 = vmatpush1.msra.mxu1 %v465_v8  ;;  %v3074_v8 = vld [vmem:[%s3757_s3 + $0x1a8] sm:$0xff] }
  0x6f   : > { %1136 = vmatprep.subr.mxu1 %v3762_v1  ;;  %2150 = vmatpush3.msra.mxu0 %v439_v19  ;;  %v451_v19 = vld [vmem:[%s2710_s17 + $0xa8] sm:$0xff] }
  0x70   : > { %1137 = vmatpush1.msra.mxu1 %v464_v11  ;;  %2151 = vmatprep.subr.mxu0 %v454_v21  ;;  %v436_v11 = vld [vmem:[%s2710_s17 + $0x30] sm:$0xff]  ;;  %v3097_v21 = vld [vmem:[%s3757_s3 + $0x198] sm:$0xff] }
  0x71   : > { %925 = vmatmul.mubr.f32.gmra.mxu1 %v2994_v14  ;;  %1138 = vmatprep.subr.mxu1 %v3762_v1 }
  0x72   : > { %2008 = vmatprep.mubr.msk.f32.mxu1 %vm627_vm0, %v2999_v15  ;;  %1139 = vmatpush1.msra.mxu1 %v463_v17  ;;  %v3083_v17 = vld [vmem:[%s3757_s3 + $0x1a0] sm:$0xff] }
  0x73   : > { %1140 = vmatprep.subr.mxu1 %v3762_v1  ;;  %804 = vmatprep.mubr.f32.mxu0 %v3026_v33 }
  0x74   : > { %1141 = vmatpush1.msra.mxu1 %v462_v20  ;;  %2152 = vmatpush3.msra.mxu0 %v438_v35  ;;  %v3091_v20 = vld [vmem:[%s3757_s3 + $0x170] sm:$0xff]  ;;  %v486_v35 = vld [vmem:[%s2710_s17 + $0x1c0] sm:$0xff] }
  0x75   : > { %930 = vmatmul.mubr.f32.gmra.mxu1 %v3014_v23  ;;  %1148 = vmatprep.subr.mxu1 %v3762_v1 }
  0x76   : > { %2009 = vmatprep.mubr.msk.f32.mxu1 %vm627_vm0, %v3019_v27  ;;  %2016 = vmatpush2.msk.msra.mxu1 %vm676_vm1, %v490_v29  ;;  %v435_v29 = vld [vmem:[%s2710_s17 + $0x28] sm:$0xff] }
  0x77   : > { %1150 = vmatprep.subr.mxu1 %v3762_v1  ;;  %805 = vmatmul.mubr.f32.gmra.mxu0 %v3043_v45 }
  0x78   : > { %1151 = vmatpush2.msra.mxu1 %v489_v39  ;;  %2153 = vmatprep.subr.mxu0 %v453_v51  ;;  %v450_v39 = vld [vmem:[%s2710_s17 + $0xa0] sm:$0xff]  ;;  %v3108_v51 = vld [vmem:[%s3757_s3 + $0x1c8] sm:$0xff] }
  0x79   : > { %935 = vmatmul.mubr.f32.gmra.mxu1 %v3037_v41  ;;  %1152 = vmatprep.subr.mxu1 %v3762_v1  ;;  %3780 = vst [vmem:[#allocation5_spill] sm:$0xff] %v3108_v51 }
  0x7a   : > { %2010 = vmatprep.mubr.msk.f32.mxu1 %vm627_vm0, %v3048_v47  ;;  %2154 = vmatpush3.msra.mxu0 %v437_v54  ;;  %v3115_v54 = vld [vmem:[%s3757_s3 + $0x190] sm:$0xff] }
  0x7b   : > { %1153 = vmatpush2.msra.mxu1 %v488_v56  ;;  %2155 = vmatprep.subr.mxu0 %v452_v60  ;;  %v434_v56 = vld [vmem:[%s2710_s17 + $0x20] sm:$0xff]  ;;  %v485_v60 = vld [vmem:[%s2710_s17 + $0x1b8] sm:$0xff] }
  0x7c   : > { %1154 = vmatprep.subr.mxu1 %v3762_v1  ;;  %809 = vmatprep.mubr.f32.mxu0 %v3074_v8 }
  0x7d   : > { %940 = vmatmul.mubr.f32.gmra.mxu1 %v3063_v63  ;;  %2156 = vmatpush3.msra.mxu0 %v436_v11  ;;  %v3122_v11 = vld [vmem:[%s3757_s3 + $0x1c0] sm:$0xff] }
  0x7e   : > { %2011 = vmatprep.mubr.msk.f32.mxu1 %vm627_vm0, %v3069_v3  ;;  %1155 = vmatpush2.msra.mxu1 %v487_v13  ;;  %3781 = vst [vmem:[#allocation6_spill] sm:$0xff] %v3122_v11  ;;  %v449_v13 = vld [vmem:[%s2710_s17 + $0x98] sm:$0xff] }
  0x7f   : > { %810 = vmatmul.mubr.f32.gmra.mxu0 %v3083_v17  ;;  %2157 = vmatprep.subr.mxu0 %v451_v19  ;;  %v3131_v19 = vld [vmem:[%s3757_s3 + $0x1b8] sm:$0xff] }
  0x80   : > { %1156 = vmatprep.subr.mxu1 %v3762_v1  ;;  %2158 = vmatpush3.msra.mxu0 %v435_v29  ;;  %3782 = vst [vmem:[#allocation7_spill] sm:$0xff] %v3131_v19  ;;  %v433_v29 = vld [vmem:[%s2710_s17 + $0x18] sm:$0xff] }
  0x81   : > { %945 = vmatmul.mubr.f32.gmra.mxu1 %v3091_v20  ;;  %2159 = vmatprep.subr.mxu0 %v450_v39  ;;  %v448_v39 = vld [vmem:[%s2710_s17 + $0x90] sm:$0xff] }
  0x82   : > { %2012 = vmatprep.mubr.msk.f32.mxu1 %vm627_vm0, %v3097_v21  ;;  %1157 = vmatpush2.msra.mxu1 %v486_v35  ;;  %v484_v35 = vld [vmem:[%s2710_s17 + $0x1b0] sm:$0xff] }
  0x83   : > { %1158 = vmatprep.subr.mxu1 %v3762_v1  ;;  %814 = vmatprep.mubr.f32.mxu0 %v3108_v51  ;;  %v482_v51 = vld [vmem:[%s2710_s17 + $0x1a0] sm:$0xff] }
  0x84   : > { %2160 = vmatpush3.msra.mxu0 %v434_v56  ;;  %1159 = vmatpush2.msra.mxu1 %v485_v60  ;;  %v3141_v56 = vld [vmem:[%s3757_s3 + $0x1b0] sm:$0xff]  ;;  %v3148_v60 = vld [vmem:[%s3757_s3 + $0x1e8] sm:$0xff] }
  0x85   : > { %950 = vmatmul.mubr.f32.gmra.mxu1 %v3115_v54  ;;  %815 = vmatmul.mubr.f32.gmra.mxu0 %v3122_v11  ;;  %3783 = vst [vmem:[#allocation8_spill] sm:$0xff] %v3141_v56  ;;  %3784 = vst [vmem:[#allocation9_spill] sm:$0xff] %v3148_v60  ;;  %v3155_v11 = vld [vmem:[%s3757_s3 + $0x1e0] sm:$0xff] }
  0x86   : > { %2161 = vmatprep.subr.mxu0 %v449_v13  ;;  %1160 = vmatprep.subr.mxu1 %v3762_v1  ;;  %v432_v13 = vld [vmem:[%s2710_s17 + $0x10] sm:$0xff]  ;;  %v483_v1 = vld [vmem:[%s2710_s17 + $0x1a8] sm:$0xff] }
  0x87   : > { %2013 = vmatprep.mubr.msk.f32.mxu1 %vm627_vm0, %v3131_v19  ;;  %2162 = vmatpush3.msra.mxu0 %v433_v29  ;;  %v3785_v19 = vmov 0.0   ;;  %v447_v29 = vld [vmem:[%s2710_s17 + $0x88] sm:$0xff] }
  0x88   : > { %1161 = vmatpush2.msra.mxu1 %v484_v35  ;;  %2163 = vmatprep.subr.mxu0 %v448_v39  ;;  %v3164_v35 = vld [vmem:[%s3757_s3 + $0x1d8] sm:$0xff]  ;;  %v431_v39 = vld [vmem:[%s2710_s17 + $0x8] sm:$0xff] }
  0x89   : > { %955 = vmatmul.mubr.f32.gmra.mxu1 %v3141_v56  ;;  %1162 = vmatprep.subr.mxu1 %v3785_v19  ;;  %v446_v56 = vld [vmem:[%s2710_s17 + $0x80] sm:$0xff] }
  0x8a   : > { %819 = vmatprep.mubr.f32.mxu0 %v3148_v60  ;;  %2164 = vmatpush3.msra.mxu0 %v432_v13  ;;  %v3174_v60 = vld [vmem:[%s3757_s3 + $0x1d0] sm:$0xff]  ;;  %v430_v13 = vld [vmem:[%s2710_s17] sm:$0xff] }
  0x8b   : > { %1163 = vmatpush2.msra.mxu1 %v483_v1  ;;  %820 = vmatmul.mubr.f32.gmra.mxu0 %v3155_v11  ;;  %v481_v1 = vld [vmem:[%s2710_s17 + $0x198] sm:$0xff] }
  0x8c   : > { %2165 = vmatprep.subr.mxu0 %v447_v29  ;;  %1164 = vmatprep.subr.mxu1 %v3785_v19  ;;  %v3185_v29 = vld [vmem:[%s3757_s3 + $0x1f8] sm:$0xff] }
  0x8d   : > { %2014 = vmatprep.mubr.msk.f32.mxu1 %vm627_vm0, %v3164_v35  ;;  %2166 = vmatpush3.msra.mxu0 %v431_v39  ;;  %v480_v39 = vld [vmem:[%s2710_s17 + $0x190] sm:$0xff] }
  0x8e   : > { %1165 = vmatpush2.msra.mxu1 %v482_v51  ;;  %2167 = vmatprep.subr.mxu0 %v446_v56  ;;  %v3193_v51 = vld [vmem:[%s3757_s3 + $0x1f0] sm:$0xff]  ;;  %v479_v56 = vld [vmem:[%s2710_s17 + $0x188] sm:$0xff] }
  0x8f   : > { %960 = vmatmul.mubr.f32.gmra.mxu1 %v3174_v60  ;;  %1166 = vmatprep.subr.mxu1 %v3785_v19 }
  0x90   : > { %2168 = vmatpush3.msra.mxu0 %v430_v13  ;;  %1037 = vmatprep.mubr.f32.mxu0 %v2607_v0  ;;  %v478_v0 = vld [vmem:[%s2710_s17 + $0x180] sm:$0xff]  ;;  %v520_v13 = vld [vmem:[%s3207_s22 + $0xe8] sm:$0xff]  ;;  %s341_s17 = sand.u32 1, %s2485_s25  }
  0x91   : > { %1167 = vmatpush2.msra.mxu1 %v481_v1  ;;  %1038 = vmatmul.mubr.f32.vlgmr.msra.gmra.mxu0 %v2697_v53  ;;  %v538_v53 = vld [vmem:[%s3207_s22 + $0x178] sm:$0xff]  ;;  %v504_v1 = vld [vmem:[%s3207_s22 + $0x68] sm:$0xff]  ;;  %s342_s30 = scalar_lea.vmem [#allocation2], %s341_s17  ;;  %s1866_s16 = scalar_lea.sflag [#allocation3], %s341_s17 }
  0x92   : > { %1168 = vmatprep.subr.mxu1 %v3785_v19  ;;  %2015 = vmatprep.mubr.msk.f32.mxu1 %vm627_vm0, %v3185_v29  ;;  %s1879_s8 = sshll.u32 %s342_s30, 4  ;;  %s1880_s8 = int_to_ptr.vmem [resolvable:$true] %s1879_s8 }
  0x93   : > { %1169 = vmatpush2.msra.mxu1 %v480_v39  ;;  %1042 = vmatprep.mubr.f32.mxu0 %v2704_v55  ;;  %v522_v55 = vld [vmem:[%s3207_s22 + $0xf8] sm:$0xff]  ;;  %v535_v39 = vld [vmem:[%s3207_s22 + $0x160] sm:$0xff]  ;;  %s2425_s18 = scalar_lea.vmem %s1880_s8, 16 }
  0x94   : > { %965 = vmatmul.mubr.f32.gmra.mxu1 %v3193_v51  ;;  %1170 = vmatprep.subr.mxu1 %v3785_v19  ;;  %p2426_p12 = scmp.ne.s32.totalorder %s1880_s8, %s2425_s18 }
  0x95   : > { %1171 = vmatpush2.msra.mxu1 %v479_v56  ;;  %1043 = vmatmul.mubr.f32.gmra.mxu0 %v2721_v59  ;;  %v506_v59 = vld [vmem:[%s3207_s22 + $0x78] sm:$0xff] }
  0x96   : > { %1172 = vmatprep.subr.mxu1 %v3785_v19  ;;  %2017 = vmatprep.mubr.msk.f32.mxu1 %vm627_vm0, %v2614_v2  ;;  %v537_v2 = vld [vmem:[%s3207_s22 + $0x170] sm:$0xff]  ;;  %v534_v56 = vld [vmem:[%s3207_s22 + $0x158] sm:$0xff]  ;;  %p2427_p13 = pnand %p2426_p12, %p2588_p4 }
  0x97   : > { %1173 = vmatpush2.msra.mxu1 %v478_v0  ;;  %1047 = vmatprep.mubr.f32.mxu0 %v2728_v61  ;;  %v521_v61 = vld [vmem:[%s3207_s22 + $0xf0] sm:$0xff] }
  0x98   : > { %1175 = vmatmul.mubr.f32.vlgmr.msra.gmra.mxu1 %v2805_v25  ;;  %1387 = vmatprep.subr.mxu1 %v3785_v19  ;;  %v533_v0 = vld [vmem:[%s3207_s22 + $0x150] sm:$0xff]  ;;  %p2428_p0 = pneg %p2427_p13 }
  0x99   : > { %1048 = vmatmul.mubr.f32.gmra.mxu0 %v2739_v4  ;;  %2018 = vmatprep.mubr.msk.f32.mxu1 %vm627_vm0, %v2811_v26  ;;  %v505_v4 = vld [vmem:[%s3207_s22 + $0x70] sm:$0xff] }
  0x9a   : > { %1052 = vmatprep.mubr.f32.mxu0 %v2746_v6  ;;  %1388 = vmatpush1.msra.mxu1 %v538_v53  ;;  %v536_v6 = vld [vmem:[%s3207_s22 + $0x168] sm:$0xff] }
  0x9b   : > { %1389 = vmatprep.subr.mxu1 %v3785_v19  ;;  %2217 = vmatprep.subr.mxu0 %v522_v55  ;;  %v532_v53 = vld [vmem:[%s3207_s22 + $0x148] sm:$0xff]  ;;  %v531_v55 = vld [vmem:[%s3207_s22 + $0x140] sm:$0xff] }
  0x9c   : > { %1180 = vmatmul.mubr.f32.gmra.mxu1 %v2834_v31  ;;  %2218 = vmatpush3.msra.mxu0 %v506_v59  ;;  %v530_v59 = vld [vmem:[%s3207_s22 + $0x138] sm:$0xff] }
  0x9d   : > { %1053 = vmatmul.mubr.f32.gmra.mxu0 %v2757_v10  ;;  %2019 = vmatprep.mubr.msk.f32.mxu1 %vm627_vm0, %v2839_v32 }
  0x9e   : > { %1057 = vmatprep.mubr.f32.mxu0 %v2764_v12  ;;  %1390 = vmatpush1.msra.mxu1 %v537_v2  ;;  %v529_v2 = vld [vmem:[%s3207_s22 + $0x130] sm:$0xff] }
  0x9f   : > { %1391 = vmatprep.subr.mxu1 %v3785_v19  ;;  %2219 = vmatprep.subr.mxu0 %v521_v61  ;;  %v528_v61 = vld [vmem:[%s3207_s22 + $0x128] sm:$0xff] }
  0xa0   : > { %1185 = vmatmul.mubr.f32.gmra.mxu1 %v2863_v37  ;;  %2220 = vmatpush3.msra.mxu0 %v505_v4  ;;  %v527_v4 = vld [vmem:[%s3207_s22 + $0x120] sm:$0xff] }
  0xa1   : > { %1058 = vmatmul.mubr.f32.gmra.mxu0 %v2775_v16  ;;  %2020 = vmatprep.mubr.msk.f32.mxu1 %vm627_vm0, %v2868_v38 }
  0xa2   : > { %1392 = vmatpush1.msra.mxu1 %v536_v6  ;;  %1062 = vmatprep.mubr.f32.mxu0 %v2782_v18  ;;  %v526_v6 = vld [vmem:[%s3207_s22 + $0x118] sm:$0xff] }
  0xa3   : > { %1393 = vmatprep.subr.mxu1 %v3785_v19  ;;  %2221 = vmatprep.subr.mxu0 %v520_v13  ;;  %v519_v13 = vld [vmem:[%s3207_s22 + $0xe0] sm:$0xff] }
  0xa4   : > { %1190 = vmatmul.mubr.f32.gmra.mxu1 %v2892_v43  ;;  %2222 = vmatpush3.msra.mxu0 %v504_v1  ;;  %v525_v1 = vld [vmem:[%s3207_s22 + $0x110] sm:$0xff] }
  0xa5   : > { %1394 = vmatpush1.msra.mxu1 %v535_v39  ;;  %1063 = vmatmul.mubr.f32.gmra.mxu0 %v2793_v22  ;;  %v503_v39 = vld [vmem:[%s3207_s22 + $0x60] sm:$0xff] }
  0xa6   : > { %1395 = vmatprep.subr.mxu1 %v3785_v19  ;;  %2021 = vmatprep.mubr.msk.f32.mxu1 %vm627_vm0, %v2897_v44 }
  0xa7   : > { %1396 = vmatpush1.msra.mxu1 %v534_v56  ;;  %1067 = vmatprep.mubr.f32.mxu0 %v2800_v24  ;;  %v524_v56 = vld [vmem:[%s3207_s22 + $0x108] sm:$0xff] }
  0xa8   : > { %1195 = vmatmul.mubr.f32.gmra.mxu1 %v2921_v49  ;;  %1397 = vmatprep.subr.mxu1 %v3785_v19 }
  0xa9   : > { %1398 = vmatpush1.msra.mxu1 %v533_v0  ;;  %1068 = vmatmul.mubr.f32.gmra.mxu0 %v2819_v28  ;;  %v518_v0 = vld [vmem:[%s3207_s22 + $0xd8] sm:$0xff] }
  0xaa   : > { %1399 = vmatprep.subr.mxu1 %v3785_v19  ;;  %2022 = vmatprep.mubr.msk.f32.mxu1 %vm627_vm0, %v2926_v50 }
  0xab   : > { %1400 = vmatpush1.msra.mxu1 %v532_v53  ;;  %1072 = vmatprep.mubr.f32.mxu0 %v2827_v30  ;;  %v502_v53 = vld [vmem:[%s3207_s22 + $0x58] sm:$0xff] }
  0xac   : > { %1200 = vmatmul.mubr.f32.gmra.mxu1 %v2946_v57  ;;  %1401 = vmatprep.subr.mxu1 %v3785_v19 }
  0xad   : > { %1402 = vmatpush1.msra.mxu1 %v531_v55  ;;  %1073 = vmatmul.mubr.f32.gmra.mxu0 %v2848_v34  ;;  %v523_v55 = vld [vmem:[%s3207_s22 + $0x100] sm:$0xff] }
  0xae   : > { %1403 = vmatprep.subr.mxu1 %v3785_v19  ;;  %2023 = vmatprep.mubr.msk.f32.mxu1 %vm627_vm0, %v2951_v58 }
  0xaf   : > { %1404 = vmatpush1.msra.mxu1 %v530_v59  ;;  %1077 = vmatprep.mubr.f32.mxu0 %v2856_v36  ;;  %v517_v59 = vld [vmem:[%s3207_s22 + $0xd0] sm:$0xff] }
  0xb0   : > { %1205 = vmatmul.mubr.f32.gmra.mxu1 %v2970_v5  ;;  %1405 = vmatprep.subr.mxu1 %v3785_v19 }
  0xb1   : > { %1406 = vmatpush1.msra.mxu1 %v529_v2  ;;  %2024 = vmatprep.mubr.msk.f32.mxu1 %vm627_vm0, %v2975_v7  ;;  %v501_v2 = vld [vmem:[%s3207_s22 + $0x50] sm:$0xff] }
  0xb2   : > { %1407 = vmatprep.subr.mxu1 %v3785_v19  ;;  %1078 = vmatmul.mubr.f32.gmra.mxu0 %v2877_v40 }
  0xb3   : > { %1408 = vmatpush1.msra.mxu1 %v528_v61  ;;  %1081 = vmatprep.mubr.f32.mxu0 %v2885_v42  ;;  %v551_v61 = vld [vmem:[%s3207_s22 + $0x1e0] sm:$0x1f] }
  0xb4   : > { %1210 = vmatmul.mubr.f32.gmra.mxu1 %v2994_v14  ;;  %1409 = vmatprep.subr.mxu1 %v3785_v19 }
  0xb5   : > { %1410 = vmatpush1.msra.mxu1 %v527_v4  ;;  %2025 = vmatprep.mubr.msk.f32.mxu1 %vm627_vm0, %v2999_v15  ;;  %v516_v4 = vld [vmem:[%s3207_s22 + $0xc8] sm:$0xff] }
  0xb6   : > { %1411 = vmatprep.subr.mxu1 %v3785_v19  ;;  %1082 = vmatmul.mubr.f32.gmra.mxu0 %v2906_v46 }
  0xb7   : > { %1412 = vmatpush1.msra.mxu1 %v526_v6  ;;  %2223 = vmatprep.subr.mxu0 %v519_v13  ;;  %v500_v6 = vld [vmem:[%s3207_s22 + $0x48] sm:$0xff]  ;;  %v550_v13 = vld [vmem:[%s3207_s22 + $0x1d8] sm:$0xff] }
  0xb8   : > { %1215 = vmatmul.mubr.f32.gmra.mxu1 %v3014_v23  ;;  %1413 = vmatprep.subr.mxu1 %v3785_v19 }
  0xb9   : > { %1414 = vmatpush1.msra.mxu1 %v525_v1  ;;  %1085 = vmatprep.mubr.f32.mxu0 %v2914_v48  ;;  %v515_v1 = vld [vmem:[%s3207_s22 + $0xc0] sm:$0xff] }
  0xba   : > { %1415 = vmatprep.subr.mxu1 %v3785_v19  ;;  %2026 = vmatprep.mubr.msk.f32.mxu1 %vm627_vm0, %v3019_v27 }
  0xbb   : > { %2224 = vmatpush3.msra.mxu0 %v503_v39  ;;  %1416 = vmatpush1.msra.mxu1 %v524_v56  ;;  %v499_v39 = vld [vmem:[%s3207_s22 + $0x40] sm:$0xff]  ;;  %v549_v56 = vld [vmem:[%s3207_s22 + $0x1d0] sm:$0xff] }
  0xbc   : > { %1086 = vmatmul.mubr.f32.gmra.mxu0 %v2935_v52  ;;  %1219 = vmatmul.mubr.f32.gmra.mxu1 %v3037_v41 }
  0xbd   : > { %2225 = vmatprep.subr.mxu0 %v518_v0  ;;  %1417 = vmatprep.subr.mxu1 %v3785_v19  ;;  %v514_v0 = vld [vmem:[%s3207_s22 + $0xb8] sm:$0xff] }
  0xbe   : > { %2226 = vmatpush3.msra.mxu0 %v502_v53  ;;  %1418 = vmatpush1.msra.mxu1 %v523_v55  ;;  %v498_v53 = vld [vmem:[%s3207_s22 + $0x38] sm:$0xff]  ;;  %v548_v55 = vld [vmem:[%s3207_s22 + $0x1c8] sm:$0xff] }
  0xbf   : > { %2227 = vmatprep.subr.mxu0 %v517_v59  ;;  %1425 = vmatprep.subr.mxu1 %v3785_v19  ;;  %v513_v59 = vld [vmem:[%s3207_s22 + $0xb0] sm:$0xff] }
  0xc0   : > { %1089 = vmatprep.mubr.f32.mxu0 %v2959_v62  ;;  %2027 = vmatprep.mubr.msk.f32.mxu1 %vm627_vm0, %v3048_v47 }
  0xc1   : > { %2228 = vmatpush3.msra.mxu0 %v501_v2  ;;  %2033 = vmatpush2.msk.msra.mxu1 %vm676_vm1, %v551_v61  ;;  %v497_v2 = vld [vmem:[%s3207_s22 + $0x30] sm:$0xff]  ;;  %v547_v61 = vld [vmem:[%s3207_s22 + $0x1c0] sm:$0xff] }
  0xc2   : > { %1090 = vmatmul.mubr.f32.gmra.mxu0 %v2983_v9  ;;  %1223 = vmatmul.mubr.f32.gmra.mxu1 %v3063_v63 }
  0xc3   : > { %2229 = vmatprep.subr.mxu0 %v516_v4  ;;  %1427 = vmatprep.subr.mxu1 %v3785_v19  ;;  %v512_v4 = vld [vmem:[%s3207_s22 + $0xa8] sm:$0xff] }
  0xc4   : > { %2230 = vmatpush3.msra.mxu0 %v500_v6  ;;  %1428 = vmatpush2.msra.mxu1 %v550_v13  ;;  %v496_v6 = vld [vmem:[%s3207_s22 + $0x28] sm:$0xff]  ;;  %v546_v13 = vld [vmem:[%s3207_s22 + $0x1b8] sm:$0xff] }
  0xc5   : > { %2231 = vmatprep.subr.mxu0 %v515_v1  ;;  %1429 = vmatprep.subr.mxu1 %v3785_v19  ;;  %v511_v1 = vld [vmem:[%s3207_s22 + $0xa0] sm:$0xff] }
  0xc6   : > { %1093 = vmatprep.mubr.f32.mxu0 %v3026_v33  ;;  %2028 = vmatprep.mubr.msk.f32.mxu1 %vm627_vm0, %v3069_v3 }
  0xc7   : > { %2232 = vmatpush3.msra.mxu0 %v499_v39  ;;  %1430 = vmatpush2.msra.mxu1 %v549_v56  ;;  %v495_v39 = vld [vmem:[%s3207_s22 + $0x20] sm:$0xff]  ;;  %v545_v56 = vld [vmem:[%s3207_s22 + $0x1b0] sm:$0xff] }
  0xc8   : > { %1094 = vmatmul.mubr.f32.gmra.mxu0 %v3043_v45  ;;  %1227 = vmatmul.mubr.f32.gmra.mxu1 %v3091_v20 }
  0xc9   : > { %2233 = vmatprep.subr.mxu0 %v514_v0  ;;  %1431 = vmatprep.subr.mxu1 %v3785_v19  ;;  %v3786_v0 = vld [vmem:[#allocation5_spill] sm:$0xff] }
  0xca   : > { %2234 = vmatpush3.msra.mxu0 %v498_v53  ;;  %1432 = vmatpush2.msra.mxu1 %v548_v55  ;;  %v3787_v53 = vld [vmem:[#allocation7_spill] sm:$0xff] }
  0xcb   : > { %2235 = vmatprep.subr.mxu0 %v513_v59  ;;  %1433 = vmatprep.subr.mxu1 %v3785_v19  ;;  %v510_v55 = vld [vmem:[%s3207_s22 + $0x98] sm:$0xff] }
  0xcc   : > { %1097 = vmatprep.mubr.f32.mxu0 %v3074_v8  ;;  %2029 = vmatprep.mubr.msk.f32.mxu1 %vm627_vm0, %v3097_v21  ;;  %v494_v59 = vld [vmem:[%s3207_s22 + $0x18] sm:$0xff] }
  0xcd   : > { %2236 = vmatpush3.msra.mxu0 %v497_v2  ;;  %1434 = vmatpush2.msra.mxu1 %v547_v61  ;;  %v544_v2 = vld [vmem:[%s3207_s22 + $0x1a8] sm:$0xff] }
  0xce   : > { %1098 = vmatmul.mubr.f32.gmra.mxu0 %v3083_v17  ;;  %1231 = vmatmul.mubr.f32.gmra.mxu1 %v3115_v54  ;;  %v3788_v61 = vld [vmem:[#allocation6_spill] sm:$0xff] }
  0xcf   : > { %2237 = vmatprep.subr.mxu0 %v512_v4  ;;  %1435 = vmatprep.subr.mxu1 %v3785_v19  ;;  %v3789_v4 = vld [vmem:[#allocation8_spill] sm:$0xff] }
  0xd0   : > { %2238 = vmatpush3.msra.mxu0 %v496_v6  ;;  %1436 = vmatpush2.msra.mxu1 %v546_v13  ;;  %v509_v6 = vld [vmem:[%s3207_s22 + $0x90] sm:$0xff] }
  0xd1   : > { %2239 = vmatprep.subr.mxu0 %v511_v1  ;;  %1437 = vmatprep.subr.mxu1 %v3785_v19  ;;  %v493_v13 = vld [vmem:[%s3207_s22 + $0x10] sm:$0xff]  ;;  %v543_v1 = vld [vmem:[%s3207_s22 + $0x1a0] sm:$0xff] }
  0xd2   : > { %1101 = vmatprep.mubr.f32.mxu0 %v3786_v0  ;;  %2030 = vmatprep.mubr.msk.f32.mxu1 %vm627_vm0, %v3787_v53 }
  0xd3   : > { %2240 = vmatpush3.msra.mxu0 %v495_v39  ;;  %1438 = vmatpush2.msra.mxu1 %v545_v56  ;;  %v3790_v39 = vld [vmem:[#allocation9_spill] sm:$0xff] }
  0xd4   : > { %1102 = vmatmul.mubr.f32.gmra.mxu0 %v3788_v61  ;;  %1235 = vmatmul.mubr.f32.gmra.mxu1 %v3789_v4  ;;  %v508_v56 = vld [vmem:[%s3207_s22 + $0x88] sm:$0xff]  ;;  %v542_v4 = vld [vmem:[%s3207_s22 + $0x198] sm:$0xff] }
  0xd5   : > { %2241 = vmatprep.subr.mxu0 %v510_v55  ;;  %1439 = vmatprep.subr.mxu1 %v3785_v19  ;;  %v492_v55 = vld [vmem:[%s3207_s22 + $0x8] sm:$0xff] }
  0xd6   : > { %2242 = vmatpush3.msra.mxu0 %v494_v59  ;;  %1440 = vmatpush2.msra.mxu1 %v544_v2  ;;  %v507_v59 = vld [vmem:[%s3207_s22 + $0x80] sm:$0xff] }
  0xd7   : > { %2243 = vmatprep.subr.mxu0 %v509_v6  ;;  %1441 = vmatprep.subr.mxu1 %v3785_v19  ;;  %v491_v2 = vld [vmem:[%s3207_s22] sm:$0xff]  ;;  %v541_v6 = vld [vmem:[%s3207_s22 + $0x190] sm:$0xff] }
  0xd8   : > { %1105 = vmatprep.mubr.f32.mxu0 %v3790_v39  ;;  %2031 = vmatprep.mubr.msk.f32.mxu1 %vm627_vm0, %v3164_v35 }
  0xd9   : > { %2244 = vmatpush3.msra.mxu0 %v493_v13  ;;  %1442 = vmatpush2.msra.mxu1 %v543_v1  ;;  %v2417_v13 = vld [vmem:[%s3757_s3 + $0x8] sm:$0xff] }
  0xda   : > { %1106 = vmatmul.mubr.f32.gmra.mxu0 %v3155_v11  ;;  %1239 = vmatmul.mubr.f32.gmra.mxu1 %v3174_v60  ;;  %v540_v1 = vld [vmem:[%s3207_s22 + $0x188] sm:$0xff] }
  0xdb   : > { %2245 = vmatprep.subr.mxu0 %v508_v56  ;;  %1443 = vmatprep.subr.mxu1 %v3785_v19  ;;  %v2419_v56 = vld [vmem:[%s3757_s3 + $0x28] sm:$0xff] }
  0xdc   : > { %2246 = vmatpush3.msra.mxu0 %v492_v55  ;;  %1444 = vmatpush2.msra.mxu1 %v542_v4  ;;  %v2418_v4 = vld [vmem:[%s3757_s3] sm:$0xff] }
  0xdd   : > { %2247 = vmatprep.subr.mxu0 %v507_v59  ;;  %1445 = vmatprep.subr.mxu1 %v3785_v19  ;;  %v539_v55 = vld [vmem:[%s3207_s22 + $0x180] sm:$0xff]  ;;  %v2420_v59 = vld [vmem:[%s3757_s3 + $0x18] sm:$0xff] }
  0xde   : > { %2032 = vmatprep.mubr.msk.f32.mxu1 %vm627_vm0, %v3185_v29  ;;  %2248 = vmatpush3.msra.mxu0 %v491_v2  ;;  %v2504_v2 = vmov 0  }
  0xdf   : > { %1314 = vmatprep.mubr.f32.mxu0 %v2417_v13  ;;  %1446 = vmatpush2.msra.mxu1 %v541_v6  ;;  %v3394_v6 = vld [vmem:[%s3758_s4 + $0x38] sm:$0xff]  ;;  %v2421_v13 = vld [vmem:[%s3757_s3 + $0x20] sm:$0xff] }
  0xe0   : > { %1243 = vmatmul.mubr.f32.gmra.mxu1 %v3193_v51  ;;  %1315 = vmatmul.mubr.f32.vlgmr.msra.gmra.mxu0 %v2418_v4  ;;  %v3414_v4 = vld [vmem:[%s3758_s4 + $0x30] sm:$0xff] }
  0xe1   : > { %1447 = vmatprep.subr.mxu1 %v3785_v19  ;;  %1318 = vmatprep.mubr.f32.mxu0 %v2419_v56  ;;  %v3430_v56 = vld [vmem:[%s3758_s4 + $0x20] sm:$0xff] }
  0xe2   : > { %1448 = vmatpush2.msra.mxu1 %v540_v1  ;;  %2034 = vmatprep.mubr.msk.f32.mxu1 %vm627_vm0, %v2420_v59  ;;  %v2422_v1 = vld [vmem:[%s3757_s3 + $0x48] sm:$0xff] }
  0xe3   : > { %1449 = vmatprep.subr.mxu1 %v3785_v19  ;;  %2415 = vset.pattern.permute.xlu1 %v2504_v2  ;;  %v3406_v19 = vld [vmem:[%s3758_s4 + $0x28] sm:$0xff] }
  0xe4   : > { %1450 = vmatpush2.msra.mxu1 %v539_v55  ;;  %1319 = vmatmul.mubr.f32.gmra.mxu0 %v2421_v13 }
  0xe5   : > { %1452 = vmatmul.mubr.f32.vlgmr.msra.gmra.mxu1 %v2805_v25  ;;  %1322 = vmatprep.mubr.f32.mxu0 %v2422_v1  ;;  %v2423_v25 = vld [vmem:[%s3757_s3 + $0x40] sm:$0xff] }
  0xe6   : > { %2035 = vmatprep.mubr.msk.f32.mxu1 %vm627_vm0, %v2811_v26  ;;  %1648 = vperm.xlu1 %2415, %v3394_v6   ;;  %v2424_v26 = vld [vmem:[%s3757_s3 + $0x68] sm:$0xff] }
  0xe7   : > { %2416 = vset.pattern.permute.xlu0 %v2504_v2 }
  0xe8   : > { %1323 = vmatmul.mubr.f32.gmra.mxu0 %v2423_v25  ;;  %1638 = vperm.xlu0 %2416, %v3406_v19  }
  0xe9   : > { %1456 = vmatmul.mubr.f32.gmra.mxu1 %v2834_v31  ;;  %1326 = vmatprep.mubr.f32.mxu0 %v2424_v26 }
  0xea   : > { %2036 = vmatprep.mubr.msk.f32.mxu1 %vm627_vm0, %v2839_v32  ;;  %1643 = vperm.xlu1 %2415, %v3414_v4  }
  0xec   : > { %1327 = vmatmul.mubr.f32.gmra.mxu0 %v2757_v10 }
  0xed   : > { %1460 = vmatmul.mubr.f32.gmra.mxu1 %v2863_v37  ;;  %1330 = vmatprep.mubr.f32.mxu0 %v2764_v12 }
  0xee   : > { %2037 = vmatprep.mubr.msk.f32.mxu1 %vm627_vm0, %v2868_v38  ;;  %1633 = vperm.xlu1 %2415, %v3430_v56  }
  0xf0   : > { %1331 = vmatmul.mubr.f32.gmra.mxu0 %v2775_v16 }
  0xf1   : > { %1464 = vmatmul.mubr.f32.gmra.mxu1 %v2892_v43  ;;  %1334 = vmatprep.mubr.f32.mxu0 %v2782_v18 }
  0xf2   : > { %2038 = vmatprep.mubr.msk.f32.mxu1 %vm627_vm0, %v2897_v44 }
  0xf4   : > { %1335 = vmatmul.mubr.f32.gmra.mxu0 %v2793_v22 }
  0xf5   : > { %1468 = vmatmul.mubr.f32.gmra.mxu1 %v2921_v49  ;;  %1338 = vmatprep.mubr.f32.mxu0 %v2800_v24 }
  0xf6   : > { %2039 = vmatprep.mubr.msk.f32.mxu1 %vm627_vm0, %v2926_v50 }
  0xf8   : > { %1339 = vmatmul.mubr.f32.gmra.mxu0 %v2819_v28 }
  0xf9   : > { %1472 = vmatmul.mubr.f32.gmra.mxu1 %v2946_v57  ;;  %1342 = vmatprep.mubr.f32.mxu0 %v2827_v30 }
  0xfa   : > { %2040 = vmatprep.mubr.msk.f32.mxu1 %vm627_vm0, %v2951_v58 }
  0xfc   : > { %1343 = vmatmul.mubr.f32.gmra.mxu0 %v2848_v34 }
  0xfd   : > { %1476 = vmatmul.mubr.f32.gmra.mxu1 %v2970_v5  ;;  %1346 = vmatprep.mubr.f32.mxu0 %v2856_v36  ;;  %v2089_v10 = vpop.f32.mrf.mxu0 }
  0xfe   : > { %2041 = vmatprep.mubr.msk.f32.mxu1 %vm627_vm0, %v2975_v7 }
  0xff   : > { %v2090_v12 = vpop.f32.mrf.mxu0 }
 0x100   : > { %1347 = vmatmul.mubr.f32.gmra.mxu0 %v2877_v40  ;;  %v2091_v16 = vadd.f32 %v2090_v12, %v2089_v10 }
 0x101   : > { %1480 = vmatmul.mubr.f32.gmra.mxu1 %v2994_v14  ;;  %1351 = vmatprep.mubr.f32.mxu0 %v2885_v42  ;;  %v2092_v18 = vpop.f32.mrf.mxu0 }
 0x102   : > { %2042 = vmatprep.mubr.msk.f32.mxu1 %vm627_vm0, %v2999_v15 }
 0x103   : > { %v2093_v22 = vpop.f32.mrf.mxu0 }
 0x104   : > { %1352 = vmatmul.mubr.f32.gmra.mxu0 %v2906_v46  ;;  %v2094_v24 = vadd.f32 %v2093_v22, %v2092_v18 }
 0x105   : > { %1484 = vmatmul.mubr.f32.gmra.mxu1 %v3014_v23  ;;  %1356 = vmatprep.mubr.f32.mxu0 %v2914_v48  ;;  %v2095_v28 = vpop.f32.mrf.mxu0 }
 0x106   : > { %2043 = vmatprep.mubr.msk.f32.mxu1 %vm627_vm0, %v3019_v27 }
 0x107   : > { %v2096_v30 = vpop.f32.mrf.mxu0 }
 0x108   : > { %1357 = vmatmul.mubr.f32.gmra.mxu0 %v2935_v52  ;;  %v2097_v31 = vadd.f32 %v2096_v30, %v2095_v28  ;;  %v3791_v52 = vld [vmem:[#allocation8_spill] sm:$0xff] }
 0x109   : > { %1489 = vmatmul.mubr.f32.gmra.mxu1 %v3037_v41  ;;  %1361 = vmatprep.mubr.f32.mxu0 %v2959_v62  ;;  %v2098_v32 = vpop.f32.mrf.mxu0 }
 0x10a   : > { %2044 = vmatprep.mubr.msk.f32.mxu1 %vm627_vm0, %v3048_v47 }
 0x10b   : > { %v2099_v34 = vpop.f32.mrf.mxu0 }
 0x10c   : > { %1362 = vmatmul.mubr.f32.gmra.mxu0 %v2983_v9  ;;  %v2100_v36 = vadd.f32 %v2099_v34, %v2098_v32 }
 0x10d   : > { %1494 = vmatmul.mubr.f32.gmra.mxu1 %v3063_v63  ;;  %1366 = vmatprep.mubr.f32.mxu0 %v3026_v33  ;;  %v2101_v37 = vpop.f32.mrf.mxu0 }
 0x10e   : > { %2045 = vmatprep.mubr.msk.f32.mxu1 %vm627_vm0, %v3069_v3 }
 0x10f   : > { %v2102_v38 = vpop.f32.mrf.mxu0 }
 0x110   : > { %1367 = vmatmul.mubr.f32.gmra.mxu0 %v3043_v45  ;;  %v2103_v63 = vadd.f32 %v2102_v38, %v2101_v37 }
 0x111   : > { %1499 = vmatmul.mubr.f32.gmra.mxu1 %v3091_v20  ;;  %1371 = vmatprep.mubr.f32.mxu0 %v3074_v8  ;;  %v2104_v40 = vpop.f32.mrf.mxu0 }
 0x112   : > { %2046 = vmatprep.mubr.msk.f32.mxu1 %vm627_vm0, %v3097_v21 }
 0x113   : > { %v2105_v43 = vpop.f32.mrf.mxu0 }
 0x114   : > { %1372 = vmatmul.mubr.f32.gmra.mxu0 %v3083_v17 }
 0x115   : > { %v891_v42 = vpop.f32.mrf.mxu1  ;;  %1504 = vmatmul.mubr.f32.gmra.mxu1 %v3115_v54  ;;  %1376 = vmatprep.mubr.f32.mxu0 %v3786_v0 }
 0x116   : > { %v3486_v44 = vadd.f32 %v2091_v16, %v891_v42  ;;  %2047 = vmatprep.mubr.msk.f32.mxu1 %vm627_vm0, %v3787_v53 }
 0x117   : > { %v893_v46 = vpop.f32.mrf.mxu1  ;;  %v2107_v48 = vpop.f32.mrf.mxu0 }
 0x118   : > { %1377 = vmatmul.mubr.f32.gmra.mxu0 %v3788_v61 }
 0x119   : > { %v896_v49 = vpop.f32.mrf.mxu1  ;;  %v2108_v50 = vpop.f32.mrf.mxu0  ;;  %1509 = vmatmul.mubr.f32.gmra.mxu1 %v3791_v52  ;;  %1381 = vmatprep.mubr.f32.mxu0 %v3790_v39 }
 0x11a   : > { %v3493_v57 = vadd.f32 %v2094_v24, %v896_v49  ;;  %2048 = vmatprep.mubr.msk.f32.mxu1 %vm627_vm0, %v3164_v35  ;;  %v2109_v53 = vadd.f32 %v2108_v50, %v2107_v48 }
 0x11b   : > { %v898_v58 = vpop.f32.mrf.mxu1  ;;  %v2110_v62 = vpop.f32.mrf.mxu0 }
 0x11c   : > { %1382 = vmatmul.mubr.f32.gmra.mxu0 %v3155_v11  ;;  %v2106_v11 = vadd.f32 %v2105_v43, %v2104_v40 }
 0x11d   : > { %v901_v5 = vpop.f32.mrf.mxu1  ;;  %v2111_v7 = vpop.f32.mrf.mxu0  ;;  %1514 = vmatmul.mubr.f32.gmra.mxu1 %v3174_v60 }
 0x11e   : > { %v3499_v9 = vadd.f32 %v2097_v31, %v901_v5  ;;  %2049 = vmatprep.mubr.msk.f32.mxu1 %vm627_vm0, %v3185_v29  ;;  %v2112_v2 = vadd.f32 %v2111_v7, %v2110_v62 }
 0x11f   : > { %v903_v14 = vpop.f32.mrf.mxu1  ;;  %v2113_v15 = vpop.f32.mrf.mxu0 }
 0x121   : > { %v906_v23 = vpop.f32.mrf.mxu1  ;;  %v2114_v27 = vpop.f32.mrf.mxu0  ;;  %1519 = vmatmul.mubr.f32.gmra.mxu1 %v3193_v51 }
 0x122   : > { %v3504_v33 = vadd.f32 %v2100_v36, %v906_v23  ;;  %v2115_v41 = vadd.f32 %v2114_v27, %v2113_v15 }
 0x123   : > { %v908_v45 = vpop.f32.mrf.mxu1  ;;  %v2116_v47 = vpop.f32.mrf.mxu0 }
 0x125   : > { %v911_v3 = vpop.f32.mrf.mxu1  ;;  %v2117_v8 = vpop.f32.mrf.mxu0 }
 0x126   : > { %v912_v17 = vadd.f32 %v2103_v63, %v911_v3  ;;  %v2118_v20 = vadd.f32 %v2117_v8, %v2116_v47 }
 0x127   : > { %v913_v21 = vpop.f32.mrf.mxu1  ;;  %v2119_v54 = vpop.f32.mrf.mxu0 }
 0x128   : > { %1546 = vrot.lane.b32.xlu1 %v912_v17, %s2505_s21 }
 0x129   : > { %v916_v60 = vpop.f32.mrf.mxu1  ;;  %v2120_v35 = vpop.f32.mrf.mxu0 }
 0x12a   : > { %v917_v29 = vadd.f32 %v2106_v11, %v916_v60  ;;  %v2121_v51 = vadd.f32 %v2120_v35, %v2119_v54 }
 0x12b   : > { %v918_v0 = vpop.f32.mrf.mxu1  ;;  %v2122_v59 = vpop.f32.mrf.mxu0 }
 0x12c   : > { %1548 = vrot.lane.b32.xlu0 %v917_v29, %s2505_s21 }
 0x12d   : > { %v921_v61 = vpop.f32.mrf.mxu1  ;;  %v2123_v1 = vpop.f32.mrf.mxu0 }
 0x12e   : > { %v922_v39 = vadd.f32 %v2109_v53, %v921_v61  ;;  %v2124_v26 = vadd.f32 %v2123_v1, %v2122_v59 }
 0x12f   : > { %v923_v55 = vpop.f32.mrf.mxu1 }
 0x130   : > { %1550 = vrot.lane.b32.xlu1 %v922_v39, %s2505_s21 }
 0x131   : > { %v926_v13 = vpop.f32.mrf.mxu1 }
 0x132   : > { %v927_v25 = vadd.f32 %v2112_v2, %v926_v13 }
 0x133   : > { %v928_v10 = vpop.f32.mrf.mxu1 }
 0x134   : > { %1552 = vrot.lane.b32.xlu0 %v927_v25, %s2505_s21 }
 0x135   : > { %v931_v12 = vpop.f32.mrf.mxu1 }
 0x136   : > { %v3510_v16 = vadd.f32 %v2115_v41, %v931_v12 }
 0x137   : > { %v933_v18 = vpop.f32.mrf.mxu1  ;;  %v2125_v24 = vpop.f32.mrf.mxu0 }
 0x139   : > { %v936_v22 = vpop.f32.mrf.mxu1  ;;  %v2126_v31 = vpop.f32.mrf.mxu0 }
 0x13a   : > { %v3512_v28 = vadd.f32 %v2118_v20, %v936_v22  ;;  %v2127_v32 = vadd.f32 %v2126_v31, %v2125_v24 }
 0x13b   : > { %v938_v30 = vpop.f32.mrf.mxu1 }
 0x13d   : > { %v941_v34 = vpop.f32.mrf.mxu1 }
 0x13e   : > { %v3514_v36 = vadd.f32 %v2121_v51, %v941_v34 }
 0x13f   : > { %v943_v37 = vpop.f32.mrf.mxu1  ;;  %v2128_v38 = vpop.f32.mrf.mxu0 }
 0x141   : > { %v946_v40 = vpop.f32.mrf.mxu1  ;;  %v2129_v43 = vpop.f32.mrf.mxu0 }
 0x142   : > { %v3516_v42 = vadd.f32 %v2124_v26, %v946_v40  ;;  %v2130_v48 = vadd.f32 %v2129_v43, %v2128_v38 }
 0x143   : > { %v948_v46 = vpop.f32.mrf.mxu1 }
 0x145   : > { %v951_v49 = vpop.f32.mrf.mxu1  ;;  %v2131_v52 = vpop.f32.mrf.mxu0 }
 0x146   : > { %v3518_v50 = vadd.f32 %v2127_v32, %v951_v49 }
 0x147   : > { %v953_v58 = vpop.f32.mrf.mxu1  ;;  %v2132_v62 = vpop.f32.mrf.mxu0 }
 0x148   : > { %v2133_v5 = vadd.f32 %v2132_v62, %v2131_v52 }
 0x149   : > { %v956_v7 = vpop.f32.mrf.mxu1 }
 0x14a   : > { %v3520_v14 = vadd.f32 %v2130_v48, %v956_v7 }
 0x14b   : > { %v2134_v15 = vpop.f32.mrf.mxu0  ;;  %v958_v23 = vpop.f32.mrf.mxu1 }
 0x14d   : > { %v2135_v27 = vpop.f32.mrf.mxu0 }
 0x14e   : > { %v2136_v41 = vadd.f32 %v2135_v27, %v2134_v15 }
 0x14f   : > { %v961_v45 = vpop.f32.mrf.mxu1 }
 0x150   : > { %v3522_v47 = vadd.f32 %v2133_v5, %v961_v45 }
 0x151   : > { %v963_v63 = vpop.f32.mrf.mxu1  ;;  %v3524_v3 = vpop.f32.mrf.mxu0 }
 0x153   : > { %v3526_v8 = vpop.f32.mrf.mxu0 }
 0x154   : > { %v966_v17 = vpop.f32.mrf.mxu1 }
 0x155   : > { %v3528_v20 = vadd.f32 %v2136_v41, %v966_v17  ;;  %v2172_v21 = vpop.f32.mrf.mxu0  ;;  %v3535_v17 = vld [vmem:[%s3758_s4 + $0x10] sm:$0xff] }
 0x156   : > { %v968_v54 = vpop.f32.mrf.mxu1  ;;  %3792 = vst [vmem:[#allocation5_spill] sm:$0xff] %v3535_v17 }
 0x157   : > { %v2173_v11 = vpop.f32.mrf.mxu0 }
 0x158   : > { %v3530_v60 = vpop.f32.mrf.mxu1  ;;  %v2174_v52 = vadd.f32 %v2173_v11, %v2172_v21 }
 0x159   : > { %v2175_v35 = vpop.f32.mrf.mxu0 }
 0x15a   : > { %v1178_v29 = vpop.f32.mrf.mxu1 }
 0x15b   : > { %v2176_v51 = vpop.f32.mrf.mxu0 }
 0x15c   : > { %v1181_v0 = vpop.f32.mrf.mxu1  ;;  %v2177_v39 = vadd.f32 %v2176_v51, %v2175_v35  ;;  %v3541_v51 = vld [vmem:[%s3758_s4 + $0x18] sm:$0xff] }
 0x15d   : > { %v2178_v53 = vpop.f32.mrf.mxu0  ;;  %v1182_v7 = vadd.f32 %v2174_v52, %v1181_v0  ;;  %3793 = vst [vmem:[#allocation7_spill] sm:$0xff] %v3541_v51 }
 0x15e   : > { %v1183_v61 = vpop.f32.mrf.mxu1 }
 0x15f   : > { %v2179_v55 = vpop.f32.mrf.mxu0 }
 0x160   : > { %v1186_v59 = vpop.f32.mrf.mxu1  ;;  %v2180_v25 = vadd.f32 %v2179_v55, %v2178_v53 }
 0x161   : > { %v1187_v2 = vadd.f32 %v2177_v39, %v1186_v59  ;;  %v2181_v13 = vpop.f32.mrf.mxu0  ;;  %v2171_v59 = vadd.f32 %v3526_v8, %v3524_v3  ;;  %v3558_v3 = vld [vmem:[%s3758_s4 + $0x8] sm:$0xff] }
 0x162   : > { %v1188_v1 = vpop.f32.mrf.mxu1  ;;  %3794 = vst [vmem:[#allocation6_spill] sm:$0xff] %v3558_v3 }
 0x163   : > { %1567 = vperm.xlu0 %2416, %v1187_v2   ;;  %v2182_v26 = vpop.f32.mrf.mxu0  ;;  %v1177_v2 = vadd.f32 %v2171_v59, %v3530_v60 }
 0x164   : > { %v1191_v10 = vpop.f32.mrf.mxu1  ;;  %v2183_v24 = vadd.f32 %v2182_v26, %v2181_v13 }
 0x165   : > { %v1192_v12 = vadd.f32 %v2180_v25, %v1191_v10  ;;  %v2184_v18 = vpop.f32.mrf.mxu0  ;;  %v3573_v10 = vld [vmem:[%s3759_s5] sm:$0xff] }
 0x166   : > { %v1193_v22 = vpop.f32.mrf.mxu1  ;;  %2333 = vmatprep.mubr.msk.f32.mxu0 %vm1691_vm2, %v3573_v10 }
 0x167   : > { %1572 = vperm.xlu1 %2415, %v1192_v12   ;;  %v2185_v30 = vpop.f32.mrf.mxu0 }
 0x168   : > { %v1196_v31 = vpop.f32.mrf.mxu1  ;;  %v2186_v38 = vadd.f32 %v2185_v30, %v2184_v18 }
 0x169   : > { %v1197_v32 = vadd.f32 %v2183_v24, %v1196_v31  ;;  %v2187_v34 = vpop.f32.mrf.mxu0 }
 0x16a   : > { %v1198_v37 = vpop.f32.mrf.mxu1 }
 0x16b   : > { %1577 = vperm.xlu0 %2416, %v1197_v32   ;;  %v2188_v40 = vpop.f32.mrf.mxu0 }
 0x16c   : > { %v1201_v43 = vpop.f32.mrf.mxu1  ;;  %v2189_v58 = vadd.f32 %v2188_v40, %v2187_v34 }
 0x16d   : > { %v1202_v46 = vadd.f32 %v2186_v38, %v1201_v43  ;;  %v2190_v48 = vpop.f32.mrf.mxu0 }
 0x16e   : > { %v1203_v49 = vpop.f32.mrf.mxu1 }
 0x16f   : > { %1582 = vperm.xlu1 %2415, %v1202_v46   ;;  %v2191_v62 = vpop.f32.mrf.mxu0 }
 0x170   : > { %v1206_v5 = vpop.f32.mrf.mxu1  ;;  %v2192_v41 = vadd.f32 %v2191_v62, %v2190_v48 }
 0x171   : > { %v1207_v15 = vadd.f32 %v2189_v58, %v1206_v5 }
 0x172   : > { %v1208_v23 = vpop.f32.mrf.mxu1  ;;  %v2193_v27 = vpop.f32.mrf.mxu0 }
 0x173   : > { %1587 = vperm.xlu0 %2416, %v1207_v15   ;;  %1562 = vperm.xlu1 %2415, %v1182_v7  }
 0x174   : > { %v1211_v45 = vpop.f32.mrf.mxu1  ;;  %v2194_v63 = vpop.f32.mrf.mxu0 }
 0x175   : > { %v1212_v54 = vadd.f32 %v2192_v41, %v1211_v45 }
 0x176   : > { %v1213_v21 = vpop.f32.mrf.mxu1  ;;  %v2196_v11 = vpop.f32.mrf.mxu0 }
 0x177   : > { %1592 = vperm.xlu0 %2416, %v1212_v54   ;;  %1623 = vperm.xlu1 %2415, %v3535_v17  }
 0x178   : > { %v1216_v35 = vpop.f32.mrf.mxu1  ;;  %v2197_v29 = vpop.f32.mrf.mxu0 }
 0x17a   : > { %v1217_v0 = vpop.f32.mrf.mxu1 }
 0x17b   : > { %1628 = vperm.xlu0 %2416, %v3541_v51   ;;  %1542 = vrot.lane.b32.xlu1 %v3499_v9, %s2505_s21 }
 0x17c   : > { %v2199_v53 = vpop.f32.mrf.mxu0  ;;  %v1220_v61 = vpop.f32.mrf.mxu1 }
 0x17e   : > { %v2200_v39 = vpop.f32.mrf.mxu0  ;;  %v1221_v55 = vpop.f32.mrf.mxu1 }
 0x17f   : > { %1544 = vrot.lane.b32.xlu0 %v3504_v33, %s2505_s21  ;;  %1540 = vrot.lane.b32.xlu1 %v3493_v57, %s2505_s21  ;;  %v626_v33 = vld [vmem:[%s3760_s6] sm:$0xff] }
 0x182   : > { %v2202_v13 = vpop.f32.mrf.mxu0  ;;  %v1224_v1 = vpop.f32.mrf.mxu1 }
 0x183   : > { %1557 = vperm.xlu0 %2416, %v1177_v2   ;;  %1538 = vrot.lane.b32.xlu1 %v3486_v44, %s2505_s21  ;;  %v3567_v44 = vld [vmem:[%s3758_s4] sm:$0xff]  ;;  %s2429_s21 = sshll.u32 %s2507_s19, 4  ;;  %s2430_s21 = int_to_ptr.vmem [resolvable:$false] %s2429_s21 }
 0x184   : > { %v2203_v9 = vpop.f32.mrf.mxu0  ;;  %v1225_v25 = vpop.f32.mrf.mxu1  ;;  %3795 = vst [vmem:[#allocation9_spill] sm:$0xff] %v3567_v44  ;;  %s2431_s27 = scalar_lea.vmem %s2430_s21, 32  ;;  %p2432_p1 = scmp.lt.s32.totalorder %s1880_s8, %s2430_s21 }
 0x185   : > { %p2433_p2 = scmp.lt.s32.totalorder %s2431_s27, %s2425_s18 }
 0x187   : > { %1618 = vperm.xlu0 %2416, %v3558_v3   ;;  %1859 = vperm.xlu1 %2415, %v626_v33   ;;  %p2434_p3 = por %p2433_p2, %p2432_p1 }
 0x188   : > { %v2205_v57 = vpop.f32.mrf.mxu0  ;;  %v1228_v8 = vpop.f32.mrf.mxu1 }
 0x189   : > { %p2435_p5 = pnand %p2434_p3, %p2428_p0 }
 0x18a   : > { %v2206_v60 = vpop.f32.mrf.mxu0  ;;  %v1229_v26 = vpop.f32.mrf.mxu1 }
 0x18b   : > { %1613 = vperm.xlu0 %2416, %v3567_v44  }
 0x18e   : > { %v2208_v12 = vpop.f32.mrf.mxu0  ;;  %v1232_v18 = vpop.f32.mrf.mxu1 }
 0x190   : > { %v2209_v22 = vpop.f32.mrf.mxu0  ;;  %v1233_v24 = vpop.f32.mrf.mxu1 }
 0x194   : > { %v2211_v30 = vpop.f32.mrf.mxu0  ;;  %v1236_v31 = vpop.f32.mrf.mxu1 }
 0x196   : > { %v2212_v32 = vpop.f32.mrf.mxu0  ;;  %v1237_v34 = vpop.f32.mrf.mxu1 }
 0x197   : > { %v1649_v34 = vpop.permute.xlu1 %1648 }
 0x19a   : > { %v2214_v37 = vpop.f32.mrf.mxu0  ;;  %v1240_v38 = vpop.f32.mrf.mxu1 }
 0x19c   : > { %v2215_v40 = vpop.f32.mrf.mxu0  ;;  %v1241_v43 = vpop.f32.mrf.mxu1 }
 0x1a0   : > { %v1244_v46 = vpop.f32.mrf.mxu1  ;;  %v2249_v48 = vpop.f32.mrf.mxu0 }
 0x1a1   : > { %v1644_v48 = vpop.permute.xlu1 %1643 }
 0x1a2   : > { %v1245_v49 = vpop.f32.mrf.mxu1  ;;  %v2250_v52 = vpop.f32.mrf.mxu0 }
 0x1a4   : > { %v2252_v58 = vpop.f32.mrf.mxu0 }
 0x1a5   : > { %v1453_v62 = vpop.f32.mrf.mxu1 }
 0x1a6   : > { %v2253_v5 = vpop.f32.mrf.mxu0  ;;  %v1639_v62 = vpop.permute.xlu0 %1638 }
 0x1a7   : > { %v1454_v7 = vpop.f32.mrf.mxu1 }
 0x1a8   : > { %v2255_v15 = vpop.f32.mrf.mxu0  ;;  %v1634_v7 = vpop.permute.xlu1 %1633 }
 0x1a9   : > { %v1457_v23 = vpop.f32.mrf.mxu1 }
 0x1aa   : > { %v2256_v27 = vpop.f32.mrf.mxu0 }
 0x1ab   : > { %v1458_v41 = vpop.f32.mrf.mxu1 }
 0x1ac   : > { %v2258_v45 = vpop.f32.mrf.mxu0 }
 0x1ad   : > { %v1461_v63 = vpop.f32.mrf.mxu1 }
 0x1ae   : > { %v2259_v54 = vpop.f32.mrf.mxu0  ;;  %v3609_v63 = vpop.permute.xlu1 %1546 }
 0x1af   : > { %v1462_v21 = vpop.f32.mrf.mxu1  ;;  %v3611_v54 = vpop.permute.xlu0 %1548 }
 0x1b0   : > { %v2261_v11 = vpop.f32.mrf.mxu0 }
 0x1b1   : > { %v1465_v35 = vpop.f32.mrf.mxu1 }
 0x1b2   : > { %v2262_v29 = vpop.f32.mrf.mxu0 }
 0x1b3   : > { %v1466_v0 = vpop.f32.mrf.mxu1  ;;  %v3617_v29 = vpop.permute.xlu1 %1550 }
 0x1b4   : > { %v2264_v53 = vpop.f32.mrf.mxu0  ;;  %v3619_v0 = vpop.permute.xlu0 %1552 }
 0x1b5   : > { %v1469_v61 = vpop.f32.mrf.mxu1 }
 0x1b6   : > { %v2265_v39 = vpop.f32.mrf.mxu0 }
 0x1b7   : > { %v1470_v55 = vpop.f32.mrf.mxu1 }
 0x1b8   : > { %v2267_v59 = vpop.f32.mrf.mxu0 }
 0x1b9   : > { %v1473_v2 = vpop.f32.mrf.mxu1  ;;  %v1524_v59 = vlaneseq }
 0x1ba   : > { %v2268_v13 = vpop.f32.mrf.mxu0 }
 0x1bb   : > { %v1474_v1 = vpop.f32.mrf.mxu1 }
 0x1bc   : > { %v2270_v9 = vpop.f32.mrf.mxu0 }
 0x1bd   : > { %v1477_v25 = vpop.f32.mrf.mxu1  ;;  %v3621_v9 = vand.u32 127, %v1524_v59 }
 0x1be   : > { %v2271_v33 = vpop.f32.mrf.mxu0 }
 0x1bf   : > { %v1478_v57 = vpop.f32.mrf.mxu1  ;;  %vm1554_vm3 = vcmp.eq.s32.totalorder %v3621_v9, 0  ;;  %vm1529_vm4 = vcmp.lt.s32.totalorder %v3621_v9, 16  ;;  %vm1847_vm5 = vcmp.eq.s32.totalorder %v3621_v9, 127 }
 0x1c0   : > { %v3577_v8 = vpop.f32.mrf.mxu0 }
 0x1c1   : > { %v1481_v60 = vpop.f32.mrf.mxu1 }
 0x1c2   : > { %v3579_v26 = vpop.f32.mrf.mxu0 }
 0x1c3   : > { %v1482_v12 = vpop.f32.mrf.mxu1 }
 0x1c4   : > { %v3581_v18 = vpop.f32.mrf.mxu0 }
 0x1c5   : > { %v3583_v22 = vpop.f32.mrf.mxu1 }
 0x1c6   : > { %v3585_v30 = vpop.f32.mrf.mxu0 }
 0x1c7   : > { %v1487_v24 = vpop.f32.mrf.mxu1 }
 0x1c8   : > { %v3589_v37 = vpop.f32.mrf.mxu0  ;;  %v1536_v24 = vsel %vm1529_vm4, %v3522_v47, 0.0 }
 0x1c9   : > { %v3587_v31 = vpop.f32.mrf.mxu1 }
 0x1ca   : > { %v3593_v43 = vpop.f32.mrf.mxu0 }
 0x1cb   : > { %v1492_v32 = vpop.f32.mrf.mxu1 }
 0x1cc   : > { %v3597_v52 = vpop.f32.mrf.mxu0 }
 0x1cd   : > { %v3591_v38 = vpop.f32.mrf.mxu1 }
 0x1ce   : > { %v3601_v15 = vpop.f32.mrf.mxu0 }
 0x1cf   : > { %v1497_v40 = vpop.f32.mrf.mxu1 }
 0x1d0   : > { %v3605_v41 = vpop.f32.mrf.mxu0 }
 0x1d1   : > { %v3595_v46 = vpop.f32.mrf.mxu1 }
 0x1d2   : > { %v3613_v11 = vpop.f32.mrf.mxu0 }
 0x1d3   : > { %v1502_v49 = vpop.f32.mrf.mxu1 }
 0x1d4   : > { %v2288_v61 = vpop.f32.mrf.mxu0 }
 0x1d5   : > { %v3599_v58 = vpop.f32.mrf.mxu1 }
 0x1d6   : > { %v2289_v2 = vpop.f32.mrf.mxu0 }
 0x1d7   : > { %v1507_v5 = vpop.f32.mrf.mxu1 }
 0x1d8   : > { %v2291_v25 = vpop.f32.mrf.mxu0 }
 0x1d9   : > { %v3603_v23 = vpop.f32.mrf.mxu1 }
 0x1da   : > { %v2292_v12 = vpop.f32.mrf.mxu0 }
 0x1db   : > { %v1512_v27 = vpop.f32.mrf.mxu1 }
 0x1dc   : > { %v1535_v27 = vsel %vm1529_vm4, %v3520_v14, 0.0  ;;  %v2294_v59 = vpop.f32.mrf.mxu0 }
 0x1dd   : > { %v3607_v45 = vpop.f32.mrf.mxu1 }
 0x1de   : > { %v1568_v39 = vpop.permute.xlu0 %1567  ;;  %v2295_v17 = vpop.f32.mrf.mxu0 }
 0x1df   : > { %v1517_v21 = vpop.f32.mrf.mxu1 }
 0x1e0   : > { %v1537_v21 = vsel %vm1529_vm4, %v3528_v20, 0.0 }
 0x1e1   : > { %v3615_v35 = vpop.f32.mrf.mxu1 }
 0x1e2   : > { %v1573_v55 = vpop.permute.xlu1 %1572 }
 0x1e3   : > { %v1522_v53 = vpop.f32.mrf.mxu1 }
 0x1e6   : > { %v1578_v13 = vpop.permute.xlu0 %1577 }
 0x1e7   : > { %v1599_v53 = vsel %vm1554_vm3, %v1578_v13, %v3609_v63 }
 0x1ea   : > { %v1583_v1 = vpop.permute.xlu1 %1582 }
 0x1eb   : > { %v1600_v32 = vsel %vm1554_vm3, %v1583_v1, %v3611_v54 }
 0x1ec   : > { %v1608_v1 = vadd.f32 %v1600_v32, %v1535_v27  ;;  %v1532_v32 = vsel %vm1529_vm4, %v3514_v36, 0.0  ;;  %v2293_v36 = vadd.f32 %v2292_v12, %v2291_v25  ;;  %v2287_v25 = vadd.f32 %v3613_v11, %v3605_v41 }
 0x1ed   : > { %v1530_v41 = vsel %vm1529_vm4, %v3510_v16, 0.0 }
 0x1ee   : > { %v1588_v33 = vpop.permute.xlu0 %1587  ;;  %v1563_v57 = vpop.permute.xlu1 %1562  ;;  %v1506_v11 = vadd.f32 %v2287_v25, %v3599_v58 }
 0x1ef   : > { %v1601_v60 = vsel %vm1554_vm3, %v1588_v33, %v3617_v29 }
 0x1f0   : > { %v1609_v40 = vadd.f32 %v1601_v60, %v1536_v24  ;;  %v1534_v60 = vsel %vm1529_vm4, %v3518_v50, 0.0 }
 0x1f1   : > { %v1607_v14 = vadd.f32 %v1599_v53, %v1534_v60 }
 0x1f2   : > { %v1593_v49 = vpop.permute.xlu0 %1592  ;;  %v1624_v5 = vpop.permute.xlu1 %1623  ;;  %v1657_v3 = vadd.f32 %v1644_v48, %v1609_v40  ;;  %v2296_v48 = vadd.f32 %v2295_v17, %v2294_v59 }
 0x1f3   : > { %v1602_v47 = vsel %vm1554_vm3, %v1593_v49, %v3619_v0  ;;  %v1656_v49 = vadd.f32 %v1639_v62, %v1608_v1 }
 0x1f4   : > { %v1610_v33 = vadd.f32 %v1602_v47, %v1537_v21  ;;  %v1665_v53 = vmax.f32 %v1657_v3, 0.0  ;;  %v1655_v47 = vadd.f32 %v1634_v7, %v1607_v14  ;;  %v1521_v17 = vadd.f32 %v2296_v48, %v3615_v35 }
 0x1f5   : > { %v1664_v40 = vmax.f32 %v1656_v49, 0.0 }
 0x1f6   : > { %v1629_v24 = vpop.permute.xlu0 %1628  ;;  %v3649_v44 = vpop.permute.xlu1 %1542  ;;  %v1658_v20 = vadd.f32 %v1649_v34, %v1610_v33  ;;  %v1533_v34 = vsel %vm1529_vm4, %v3516_v42, 0.0  ;;  %v1663_v7 = vmax.f32 %v1655_v47, 0.0  ;;  %v2290_v42 = vadd.f32 %v2289_v2, %v2288_v61 }
 0x1f7   : > { %v1597_v13 = vsel %vm1554_vm3, %v1568_v39, %v3649_v44  ;;  %v1674_v14 = vadd.f32 %v3619_v0, %v1521_v17  ;;  %v2281_v0 = vadd.f32 %v3593_v43, %v3589_v37  ;;  %v2275_v37 = vadd.f32 %v3579_v26, %v3577_v8  ;;  %v617_v43 = vld [vmem:[%s3759_s5 + $0x8] sm:$0xff] }
 0x1f8   : > { %v1666_v51 = vmax.f32 %v1658_v20, 0.0  ;;  %v1605_v27 = vadd.f32 %v1597_v13, %v1532_v32 }
 0x1f9   : > { %v1682_v16 = vadd.f32 %v1674_v14, %v3394_v6  ;;  %v1496_v6 = vadd.f32 %v2281_v0, %v3591_v38  ;;  %v1486_v26 = vadd.f32 %v2275_v37, %v3583_v22  ;;  %v3796_v38 = vld [vmem:[#allocation7_spill] sm:$0xff] }
 0x1fa   : > { %2317 = vmatprep.subr.mxu0 %v1666_v51  ;;  %v1545_v50 = vpop.permute.xlu0 %1544  ;;  %v3657_v21 = vpop.permute.xlu1 %1540  ;;  %v1653_v60 = vadd.f32 %v1624_v5, %v1605_v27  ;;  %v1511_v5 = vadd.f32 %v2290_v42, %v3603_v23 }
 0x1fb   : > { %v1598_v39 = vsel %vm1554_vm3, %v1573_v55, %v1545_v50  ;;  %2318 = vmatpush3.msra.mxu0 %v1666_v51  ;;  %v1596_v1 = vsel %vm1554_vm3, %v1563_v57, %v3657_v21  ;;  %v1531_v51 = vsel %vm1529_vm4, %v3512_v28, 0.0  ;;  %v1516_v57 = vadd.f32 %v2293_v36, %v3607_v45 }
 0x1fc   : > { %v1606_v62 = vadd.f32 %v1598_v39, %v1533_v34  ;;  %2319 = vmatprep.subr.mxu0 %v1665_v53  ;;  %v1604_v12 = vadd.f32 %v1596_v1, %v1531_v51  ;;  %v1661_v2 = vmax.f32 %v1653_v60, 0.0  ;;  %v2284_v45 = vadd.f32 %v3601_v15, %v3597_v52 }
 0x1fd   : > { %2320 = vmatpush3.msra.mxu0 %v1665_v53  ;;  %v1672_v49 = vadd.f32 %v3611_v54, %v1511_v5  ;;  %v2278_v52 = vadd.f32 %v3585_v30, %v3581_v18  ;;  %v1671_v15 = vadd.f32 %v3609_v63, %v1506_v11  ;;  %v1690_v18 = vmax.f32 %v1682_v16, 0.0 }
 0x1fe   : > { %2321 = vmatprep.subr.mxu0 %v1664_v40  ;;  %v1558_v3 = vpop.permute.xlu0 %1557  ;;  %v1654_v33 = vadd.f32 %v1629_v24, %v1606_v62  ;;  %v1539_v59 = vpop.permute.xlu1 %1538  ;;  %v1673_v24 = vadd.f32 %v3617_v29, %v1516_v57  ;;  %v1501_v58 = vadd.f32 %v2284_v45, %v3595_v46  ;;  %v1669_v63 = vadd.f32 %v3649_v44, %v1496_v6  ;;  %v3797_v44 = vld [vmem:[#allocation5_spill] sm:$0xff] }
 0x1ff   : > { %2322 = vmatpush3.msra.mxu0 %v1664_v40  ;;  %v1595_v61 = vsel %vm1554_vm3, %v1558_v3, %v1539_v59  ;;  %v1680_v30 = vadd.f32 %v1672_v49, %v3406_v19  ;;  %v1491_v46 = vadd.f32 %v2278_v52, %v3587_v31  ;;  %v1679_v8 = vadd.f32 %v1671_v15, %v3430_v56  ;;  %v3798_v56 = vld [vmem:[#allocation6_spill] sm:$0xff] }
 0x200   : > { %2323 = vmatprep.subr.mxu0 %v1663_v7  ;;  %v1662_v55 = vmax.f32 %v1654_v33, 0.0  ;;  %v1603_v13 = vadd.f32 %v1595_v61, %v1530_v41  ;;  %v1681_v27 = vadd.f32 %v1673_v24, %v3414_v4  ;;  %v1670_v54 = vadd.f32 %v1545_v50, %v1501_v58 }
 0x201   : > { %2324 = vmatpush3.msra.mxu0 %v1663_v7  ;;  %v1668_v19 = vadd.f32 %v3657_v21, %v1491_v46  ;;  %v1688_v31 = vmax.f32 %v1680_v30, 0.0  ;;  %v1677_v53 = vadd.f32 %v1669_v63, %v3797_v44  ;;  %v1667_v47 = vadd.f32 %v1539_v59, %v1486_v26 }
 0x202   : > { %2325 = vmatprep.subr.mxu0 %v1662_v55  ;;  %v1619_v35 = vpop.permute.xlu0 %1618  ;;  %v1689_v4 = vmax.f32 %v1681_v27, 0.0  ;;  %v1678_v50 = vadd.f32 %v1670_v54, %v3796_v38  ;;  %v1687_v34 = vmax.f32 %v1679_v8, 0.0  ;;  %v1860_v59 = vpop.permute.xlu1 %1859 }
 0x203   : > { %v1652_v28 = vadd.f32 %v1619_v35, %v1604_v12  ;;  %2326 = vmatpush3.msra.mxu0 %v1662_v55  ;;  %v1676_v48 = vadd.f32 %v1668_v19, %v3798_v56  ;;  %v1685_v62 = vmax.f32 %v1677_v53, 0.0 }
 0x204   : > { %2327 = vmatprep.subr.mxu0 %v1661_v2  ;;  %v1686_v39 = vmax.f32 %v1678_v50, 0.0 }
 0x205   : > { %v1660_v20 = vmax.f32 %v1652_v28, 0.0  ;;  %2328 = vmatpush3.msra.mxu0 %v1661_v2  ;;  %v1684_v21 = vmax.f32 %v1676_v48, 0.0 }
 0x206   : > { %v1614_v23 = vpop.permute.xlu0 %1613 }
 0x207   : > { %v1651_v32 = vadd.f32 %v1614_v23, %v1603_v13  ;;  %2329 = vmatprep.subr.mxu0 %v1660_v20 }
 0x208   : > { %2330 = vmatpush3.msra.mxu0 %v1660_v20 }
 0x209   : > { %v1659_v29 = vmax.f32 %v1651_v32, 0.0 }
 0x20b   : > { %2331 = vmatprep.subr.mxu0 %v1659_v29 }
 0x20c   : > { %2332 = vmatpush3.msra.mxu0 %v1659_v29 }
 0x20d   : > { %2336 = vmatprep.subr.mxu0 %v1690_v18  ;;  %2334 = vmatmul.mubr.msk.f32.vlgmr.msra.gmra.mxu0 %vm1691_vm2, %v617_v43 }
 0x20e   : > { %2337 = vmatpush3.msra.mxu0 %v1690_v18  ;;  %2352 = vmatprep.mubr.msk.f32.mxu0 %vm1691_vm2, %v3573_v10  ;;  %v3799_v10 = vld [vmem:[#allocation9_spill] sm:$0xff] }
 0x20f   : > { %2338 = vmatprep.subr.mxu0 %v1689_v4  ;;  %v1675_v22 = vadd.f32 %v1667_v47, %v3799_v10 }
 0x210   : > { %2339 = vmatpush3.msra.mxu0 %v1689_v4 }
 0x211   : > { %2340 = vmatprep.subr.mxu0 %v1688_v31  ;;  %v1683_v40 = vmax.f32 %v1675_v22, 0.0 }
 0x212   : > { %2341 = vmatpush3.msra.mxu0 %v1688_v31 }
 0x213   : > { %2342 = vmatprep.subr.mxu0 %v1687_v34 }
 0x214   : > { %2343 = vmatpush3.msra.mxu0 %v1687_v34 }
 0x215   : > { %2344 = vmatprep.subr.mxu0 %v1686_v39 }
 0x216   : > { %2345 = vmatpush3.msra.mxu0 %v1686_v39 }
 0x217   : > { %2346 = vmatprep.subr.mxu0 %v1685_v62 }
 0x218   : > { %2347 = vmatpush3.msra.mxu0 %v1685_v62 }
 0x219   : > { %2348 = vmatprep.subr.mxu0 %v1684_v21 }
 0x21a   : > { %2349 = vmatpush3.msra.mxu0 %v1684_v21 }
 0x21b   : > { %2350 = vmatprep.subr.mxu0 %v1683_v40 }
 0x21c   : > { %2351 = vmatpush3.msra.mxu0 %v1683_v40 }
 0x21d   : > { %2353 = vmatmul.mubr.msk.f32.vlgmr.msra.gmra.mxu0 %vm1691_vm2, %v617_v43 }
 0x2cd   : > { %v2335_v36 = vpop.f32.mrf.mxu0 }
 0x2cf   : > { %v1764_v1 = vpop.f32.mrf.mxu0 }
 0x2dd   : > { %v2354_v3 = vpop.f32.mrf.mxu0 }
 0x2de   : > { %1852 = vperm.xlu0 %2416, %v2354_v3  }
 0x2df   : > { %v1839_v7 = vpop.f32.mrf.mxu0 }
 0x2e2   : > { %1848 = vrot.lane.b32.xlu0 %v2335_v36, %s2506_s20 }
 0x359   : > { %v1853_v33 = vpop.permute.xlu0 %1852 }
 0x35d   : > { %v1849_v60 = vpop.permute.xlu0 %1848 }
 0x35e   : > { %v1855_v42 = vsel %vm1847_vm5, %v1853_v33, %v1849_v60 }
 0x35f   : > { %v1856_v17 = vadd.f32 %v1855_v42, %v1764_v1 }
 0x361   : > { %v1862_v51 = vadd.f32 %v1860_v59, %v1856_v17 }
 0x363   : > { %v1863_v55 = vmax.f32 %v1862_v51, 0.0 }
 0x365   : > { %1864 = vst [vmem:[%s342_s30] sm:$0x1] %v1863_v55 }
 0x366   : > { %2438 = shalt.err (!%p2435_p5)
}
 0x367   : > { %s2439_s22 = scalar_lea.hbm %s1877_s15, 16  ;;  %s2443_s23 = scalar_lea.hbm %s3761_s7, 32 }
 0x368   : > { %p2440_p6 = scmp.ne.s32.totalorder %s1877_s15, %s2439_s22  ;;  %p2444_p10 = scmp.lt.s32.totalorder %s1877_s15, %s3761_s7 }
 0x369   : > { %p2445_p11 = scmp.lt.s32.totalorder %s2443_s23, %s2439_s22 }
 0x36a   : > { %p2441_p7 = pnand %p2440_p6, %p2588_p4 }
 0x36b   : > { %p2446_p12 = por %p2445_p11, %p2444_p10 }
 0x36c   : > { %p2442_p9 = pneg %p2441_p7 }
 0x36e   : > { %p2447_p13 = pnand %p2446_p12, %p2442_p9 }
 0x370   : > { %2450 = shalt.err (!%p2447_p13)
}
 0x371   : > { %2356 = dma.vmem_to_hbm [thread:$0]  (%p2588_p4), %s1880_s8, 16, %s1877_s15, %s1866_s16  }
 0x372 PF: > { %p2362_p0 = scmp.ge.s32.totalorder %s2501_s29, 2  ;;  %s1891_s12 = sand.u32 1, %s2481_s24  }
 0x373   : > { %s1892_s18 = scalar_lea.sflag [#allocation3], %s1891_s12 }
 0x374   : > { %p2359_p1 = pnand %p2362_p0, %p2595_p8 }
 0x376   : > { %p2360_p2 = pneg %p2359_p1 }
 0x378   : > { %2476 = dma.done.wait (%p2360_p2), %s1892_s18, 16  }
 0x379   : > { %2478 = vsyncadd (%p2360_p2), %s1892_s18, 4294967280  ;;  %s20_s29 = sadd.s32 1, %s2501_s29   ;;  %s3800_s24 = smov %s2485_s25 }
 0x37a   : > { %p17_p3 = scmp.ge.s32.totalorder %s20_s29, 4   ;;  %s3801_s25 = smov %s2489_s26 }
 0x37b   : > { %s3802_s26 = smov %s2601_s14  ;;  %s3803_s27 = smov %s2497_s28 }
 0x37c   : > { %s3804_s28 = smov %s3806_s9  ;;  %19 = sbr.rel (!%p17_p3) target bundleno = 4 (0x4), region = 89 }
 0x381   :  { %1896 = vsyncpa [#allocation3], 1 }
 0x382   :  { %1898 = vsyncpa [#allocation3 + $0x1], 1 }

</bundles_post_ra>
